<compile_context>
chip_gen: v6e
topology: v6e:2x2x1
jax: 0.10.0
libtpu: 0.0.40
codegen_flags: <defaults>
</compile_context>

<pallas_src>
import functools

import jax
import jax.numpy as jnp
import numpy as np
from jax.experimental import pallas as pl
from jax.experimental.pallas import tpu as pltpu

D_MODEL = 768
D_HID = 128
LN_EPS = 1e-5
ROW_TILE = 512                       # rows per grid step (review: 512-1024)
VMEM_LIMIT = 32 * 1024 * 1024        # safe on v5e / v6e / v7x


def _round_up(x, m):
    return ((x + m - 1) // m) * m


def _cdiv(a, b):
    return -(-a // b)


def _start_tile(rows, target=ROW_TILE):
    """Row tile for the start head: multiple of 16 (bf16 sublanes), and at
    least two grid steps whenever the input allows (dual-TC chips)."""
    half = _round_up(max(_cdiv(rows, 2), 16), 16)
    return min(target, half)


def _end_tile(m, n_spans, target=ROW_TILE):
    """Span tile for the end head: S spans (multiple of 16) -> T = S*m rows per
    grid step, capped so T ~<= target and so that >=2 grid steps are used when
    there are enough spans."""
    base = 16
    s_cap = max(base, ((target // max(m, 1)) // base) * base)
    s_half = _round_up(max(_cdiv(max(n_spans, 1), 2), base), base)
    s = min(s_cap, s_half)
    return s, s * m


# --------------------------------------------------------------------------
# Kernel 1: classifier_start  (LN -> Linear -> ReLU -> LN -> Linear)
# with the LayerNorm(768) folded into the first Linear:
#   LN(x) @ w1 + c1 = inv * (x @ w1g) - (mu*inv) * u + k1
#   w1g = diag(g1) @ w1,  u = g1 @ w1,  k1 = b1 @ w1 + c1
# --------------------------------------------------------------------------
def _start_head_kernel(x_ref, w1g_ref, u_ref, k1_ref,
                       g2_ref, b2_ref, w2r_ref, c2_ref, out_ref):
    d = x_ref.shape[-1]
    inv_d = 1.0 / d

    x = x_ref[...]                                           # (T, 768) bf16
    xf = x.astype(jnp.float32)

    # LayerNorm(768) statistics only (f32)
    s1 = jnp.sum(xf, axis=-1, keepdims=True)
    s2 = jnp.sum(xf * xf, axis=-1, keepdims=True)
    mu = s1 * inv_d
    var = jnp.maximum(s2 * inv_d - mu * mu, 0.0)
    inv = jax.lax.rsqrt(var + LN_EPS)

    # Linear(768 -> 128): raw bf16 x on the MXU, f32 accumulation, LN folded
    pm = jnp.dot(x, w1g_ref[...], preferred_element_type=jnp.float32)
    h = inv * pm - (mu * inv) * u_ref[...] + k1_ref[...]
    h = jnp.maximum(h, 0.0)                                  # (T, 128)

    # LayerNorm(128)
    mu2 = jnp.mean(h, axis=-1, keepdims=True)
    hc = h - mu2
    var2 = jnp.maximum(jnp.mean(hc * hc, axis=-1, keepdims=True), 0.0)
    hn = hc * jax.lax.rsqrt(var2 + LN_EPS) * g2_ref[...] + b2_ref[...]

    # Linear(128 -> 1), bf16 MXU, lane-dense: (1,128) x (T,128)^T -> (1, T)
    out = jax.lax.dot_general(
        w2r_ref[...], hn.astype(jnp.bfloat16), (((1,), (1,)), ((), ())),
        preferred_element_type=jnp.float32) + c2_ref[...]
    out_ref[...] = out.reshape(out_ref.shape)                # (1, 1, T)


def run_start_head(x, p, *, row_tile=None):
    """x: (rows, 768) bf16 -> (rows,) f32 logits."""
    rows, d_in = x.shape
    if row_tile is None:
        row_tile = _start_tile(rows)
    r_pad = _round_up(rows, row_tile)
    if r_pad != rows:
        x = jnp.pad(x, ((0, r_pad - rows), (0, 0)))
    n_tiles = r_pad // row_tile

    # fold LayerNorm(768) gamma/beta into the first Linear (wrapper-side, tiny)
    w1f = p["w1"].astype(jnp.float32)                        # (768, 128)
    g1, b1, c1 = p["g1"], p["b1"], p["c1"]
    w1g = (g1[0, :, None] * w1f).astype(jnp.bfloat16)        # (768, 128) bf16
    u = jnp.dot(g1, w1f)                                     # (1, 128) f32
    k1 = jnp.dot(b1, w1f) + c1                               # (1, 128) f32
    w2_row = p["w2"].reshape(1, D_HID).astype(jnp.bfloat16)

    args = [x, w1g, u, k1, p["g2"], p["b2"], w2_row, p["c2"]]

    in_specs = [pl.BlockSpec((row_tile, d_in), lambda i: (i, 0))]
    in_specs += [pl.BlockSpec(a.shape, lambda i: (0, 0)) for a in args[1:]]

    out = pl.pallas_call(
        _start_head_kernel,
        out_shape=jax.ShapeDtypeStruct((n_tiles, 1, row_tile), jnp.float32),
        grid=(n_tiles,),
        in_specs=in_specs,
        out_specs=pl.BlockSpec((1, 1, row_tile), lambda i: (i, 0, 0)),
        compiler_params=pltpu.CompilerParams(
            dimension_semantics=("parallel",),
            vmem_limit_bytes=VMEM_LIMIT),
    )(*args)
    return out.reshape(r_pad)[:rows]


# --------------------------------------------------------------------------
# Kernel 2: classifier_end with the concat Linear split across the boundary.
#
#   LN(concat(x_s, x_m)) @ w1 + c1
#     = inv * (x_s@w1_topg + x_m@w1_botg) - mu*inv*u + k1
#   (gammas folded into w1_top/w1_bot in the wrapper; mu/var combined from the
#   per-half sums / sums-of-squares).
#   Rows inside a tile are POSITION-major (t = m*S + s), so expanding per-span
#   values to per-row is an exact block tile: concatenate([x]*M, axis=0).
# --------------------------------------------------------------------------
def _end_head_kernel(hspan_ref, hstart_ref,
                     w1bg_ref, w1tg_ref, u_ref, k1_ref,
                     g2_ref, b2_ref, w2r_ref, c2_ref, out_ref):
    d = hspan_ref.shape[-1]
    s_spans = hstart_ref.shape[0]
    m_span = hspan_ref.shape[0] // s_spans                   # static
    inv_2d = 1.0 / (2.0 * d)

    hm = hspan_ref[...]                                      # (T, 768) bf16
    hs = hstart_ref[...]                                     # (S, 768) bf16
    hmf = hm.astype(jnp.float32)
    hsf = hs.astype(jnp.float32)

    # split first Linear: raw bf16 rows on the MXU (gammas folded in weights)
    pm = jnp.dot(hm, w1bg_ref[...], preferred_element_type=jnp.float32)  # (T,128)
    ps = jnp.dot(hs, w1tg_ref[...], preferred_element_type=jnp.float32)  # (S,128)

    # LayerNorm(1536) statistics, per half (f32)
    sm1 = jnp.sum(hmf, axis=-1, keepdims=True)               # (T, 1)
    sm2 = jnp.sum(hmf * hmf, axis=-1, keepdims=True)
    ss1 = jnp.sum(hsf, axis=-1, keepdims=True)               # (S, 1)
    ss2 = jnp.sum(hsf * hsf, axis=-1, keepdims=True)

    # expand per-span -> per-row: position-major rows make this a block tile
    ps_r = jnp.concatenate([ps] * m_span, axis=0)            # (T, 128)
    s1_r = jnp.concatenate([ss1] * m_span, axis=0)           # (T, 1)
    s2_r = jnp.concatenate([ss2] * m_span, axis=0)           # (T, 1)

    mu = (s1_r + sm1) * inv_2d
    var = jnp.maximum((s2_r + sm2) * inv_2d - mu * mu, 0.0)
    inv = jax.lax.rsqrt(var + LN_EPS)

    h = inv * (ps_r + pm) - (mu * inv) * u_ref[...] + k1_ref[...]
    h = jnp.maximum(h, 0.0)                                  # (T, 128)

    # LayerNorm(128)
    mu2 = jnp.mean(h, axis=-1, keepdims=True)
    hc = h - mu2
    var2 = jnp.maximum(jnp.mean(hc * hc, axis=-1, keepdims=True), 0.0)
    hn = hc * jax.lax.rsqrt(var2 + LN_EPS) * g2_ref[...] + b2_ref[...]

    # Linear(128 -> 1), bf16 MXU, lane-dense (1, T)
    out = jax.lax.dot_general(
        w2r_ref[...], hn.astype(jnp.bfloat16), (((1,), (1,)), ((), ())),
        preferred_element_type=jnp.float32) + c2_ref[...]
    out_ref[...] = out.reshape(out_ref.shape)


def run_end_head(h_span_pm, h_start, s_spans, m_span, p):
    """h_span_pm: (n_tiles*S*M, 768) bf16, rows POSITION-major within each
    tile of S spans; h_start: (n_tiles*S, 768) bf16.
    Returns (n_tiles*S, M) f32 logits (span-major)."""
    n_tiles = h_start.shape[0] // s_spans
    t_rows = s_spans * m_span
    d = h_span_pm.shape[1]

    # fold LayerNorm(1536) gamma/beta into the split first Linear
    w1f = p["w1"].astype(jnp.float32)                        # (1536, 128)
    g1, b1, c1 = p["g1"], p["b1"], p["c1"]
    u = jnp.dot(g1, w1f)                                     # (1, 128)
    k1 = jnp.dot(b1, w1f) + c1                               # (1, 128)
    w1_topg = (g1[0, :d, None] * w1f[:d]).astype(jnp.bfloat16)   # start half
    w1_botg = (g1[0, d:, None] * w1f[d:]).astype(jnp.bfloat16)   # span half
    w2_row = p["w2"].reshape(1, D_HID).astype(jnp.bfloat16)

    args = [h_span_pm, h_start, w1_botg, w1_topg, u, k1,
            p["g2"], p["b2"], w2_row, p["c2"]]

    in_specs = [pl.BlockSpec((t_rows, d), lambda i: (i, 0)),
                pl.BlockSpec((s_spans, d), lambda i: (i, 0))]
    in_specs += [pl.BlockSpec(a.shape, lambda i: (0, 0)) for a in args[2:]]

    out = pl.pallas_call(
        _end_head_kernel,
        out_shape=jax.ShapeDtypeStruct((n_tiles, 1, t_rows), jnp.float32),
        grid=(n_tiles,),
        in_specs=in_specs,
        out_specs=pl.BlockSpec((1, 1, t_rows), lambda i: (i, 0, 0)),
        compiler_params=pltpu.CompilerParams(
            dimension_semantics=("parallel",),
            vmem_limit_bytes=VMEM_LIMIT),
    )(*args)

    # lane t = m*S + s  ->  (span s, position m)
    out = out.reshape(n_tiles, m_span, s_spans).transpose(0, 2, 1)
    return out.reshape(n_tiles * s_spans, m_span)


# --------------------------------------------------------------------------
# EntityDetectionFactor.forward
# --------------------------------------------------------------------------
@functools.partial(jax.jit, static_argnames=("max_length_span",))
def entity_detection_forward(params, hidden_states, src_attention_mask,
                             offsets_rows, offsets_cols, *, max_length_span):
    B, L, D = hidden_states.shape
    M = max_length_span
    N = offsets_rows.shape[0]

    # bf16 activations for the memory-bound kernels (LN stats stay f32).
    h_bf = hidden_states.astype(jnp.bfloat16)

    # ---- classifier_start over all B*L tokens ----
    logits_start = run_start_head(h_bf.reshape(B * L, D),
                                  params["start"]).reshape(B, L)

    # ---- classifier_end ----
    S, T = _end_tile(M, N)
    n_pad = _round_up(max(N, 1), S)
    n_tiles = n_pad // S
    rows_p = jnp.pad(offsets_rows, (0, n_pad - N))
    cols_p = jnp.pad(offsets_cols, (0, n_pad - N))

    # gathers stay as JAX glue, 768-wide bf16 rows only (no 1536 concat, no
    # M-fold broadcast of the start token).
    h_pad = jnp.pad(h_bf, ((0, 0), (0, M - 1), (0, 0)))
    h_start = h_bf[rows_p, cols_p]                                   # (n_pad, D)
    span_idx = cols_p[:, None] + jnp.arange(M)[None, :]              # (n_pad, M)
    h_span = h_pad[rows_p[:, None], span_idx]                        # (n_pad, M, D)
    # position-major rows inside each tile of S spans: t = m*S + s
    h_span_pm = (h_span.reshape(n_tiles, S, M, D)
                       .transpose(0, 2, 1, 3)
                       .reshape(n_tiles * M * S, D))

    logits_end = run_end_head(h_span_pm, h_start, S, M, params["end"])[:N]

    # additive attention mask (0 / -inf), applied outside the kernel
    mask_full = jnp.concatenate(
        [src_attention_mask.astype(jnp.float32),
         jnp.zeros((B, M - 1), jnp.float32)], axis=1)
    mask_full = jnp.where(mask_full.astype(bool), 0.0, -jnp.inf).astype(jnp.float32)
    mask_nm = mask_full[offsets_rows[:, None],
                        offsets_cols[:, None] + jnp.arange(M)[None, :]]

    return logits_start, logits_end + mask_nm


# --------------------------------------------------------------------------
# Deterministic synthetic parameters (w1 stored bf16 for the MXU)
# --------------------------------------------------------------------------
def init_head_params(key, d_in):
    ks = jax.random.split(key, 6)
    return {
        "g1": 1.0 + 0.1 * jax.random.normal(ks[0], (1, d_in), jnp.float32),
        "b1": 0.1 * jax.random.normal(ks[1], (1, d_in), jnp.float32),
        "w1": (0.02 * jax.random.normal(ks[2], (d_in, D_HID), jnp.float32)
               ).astype(jnp.bfloat16),
        "c1": 0.02 * jax.random.normal(ks[3], (1, D_HID), jnp.float32),
        "g2": jnp.ones((1, D_HID), jnp.float32),
        "b2": jnp.zeros((1, D_HID), jnp.float32),
        "w2": 0.02 * jax.random.normal(ks[4], (D_HID, 1), jnp.float32),
        "c2": 0.02 * jax.random.normal(ks[5], (1, 1), jnp.float32),
    }


# --------------------------------------------------------------------------
# Pure-JAX f32 reference (correctness check)
# --------------------------------------------------------------------------
def _mlp_head_ref(x, p):
    def ln(v, g, b):
        mu = jnp.mean(v, -1, keepdims=True)
        var = jnp.mean((v - mu) ** 2, -1, keepdims=True)
        return (v - mu) * jax.lax.rsqrt(var + LN_EPS) * g + b
    h = ln(x, p["g1"], p["b1"])
    h = jnp.maximum(jnp.dot(h, p["w1"].astype(jnp.float32),
                            precision="highest") + p["c1"], 0.0)
    h = ln(h, p["g2"], p["b2"])
    return jnp.dot(h, p["w2"], precision="highest") + p["c2"]


def _forward_ref(params, hidden_states, src_attention_mask,
                 offsets_rows, offsets_cols, M):
    B, L, D = hidden_states.shape
    N = offsets_rows.shape[0]
    logits_start = _mlp_head_ref(hidden_states.reshape(B * L, D),
                                 params["start"])[:, 0].reshape(B, L)
    h_pad = jnp.pad(hidden_states, ((0, 0), (0, M - 1), (0, 0)))
    h_start = hidden_states[offsets_rows, offsets_cols]
    span_idx = offsets_cols[:, None] + jnp.arange(M)[None, :]
    h_end = h_pad[offsets_rows[:, None], span_idx]
    x_end = jnp.concatenate(
        [jnp.broadcast_to(h_start[:, None, :], (N, M, D)), h_end], axis=-1)
    mask_full = jnp.concatenate(
        [src_attention_mask.astype(jnp.float32),
         jnp.zeros((B, M - 1), jnp.float32)], axis=1)
    mask_full = jnp.where(mask_full.astype(bool), 0.0, -jnp.inf)
    mask_nm = mask_full[offsets_rows[:, None], span_idx]
    logits_end = _mlp_head_ref(x_end.reshape(N * M, 2 * D),
                               params["end"])[:, 0].reshape(N, M) + mask_nm
    return logits_start, logits_end


# --------------------------------------------------------------------------
if __name__ == "__main__":
    key = jax.random.PRNGKey(0)
    k_h, k_s, k_e = jax.random.split(key, 3)

    B, L, M, N = 2, 16, 4, 6   # batch, seq, max_length_span, #selected starts

    params = {
        "start": init_head_params(k_s, D_MODEL),
        "end": init_head_params(k_e, 2 * D_MODEL),
    }

    hidden_states = jax.random.normal(k_h, (B, L, D_MODEL), jnp.float32)

    lengths = jnp.array([12, 10], jnp.int32)
    src_attention_mask = (jnp.arange(L)[None, :] < lengths[:, None]).astype(jnp.float32)

    # offsets_start as (row_indices, col_indices), same semantics as the
    # PyTorch index-tuple used by batch['offsets_start'].
    offsets_rows = jnp.array([0, 0, 0, 1, 1, 1], jnp.int32)
    offsets_cols = jnp.array([1, 3, 9, 2, 5, 8], jnp.int32)

    logits_start, logits_end = entity_detection_forward(
        params, hidden_states, src_attention_mask, offsets_rows, offsets_cols,
        max_length_span=M)
    jax.block_until_ready((logits_start, logits_end))

    ref_start, ref_end = _forward_ref(
        params, hidden_states, src_attention_mask, offsets_rows, offsets_cols, M)

    assert logits_start.shape == (B, L)
    assert logits_end.shape == (N, M)
    np.testing.assert_allclose(np.asarray(logits_start), np.asarray(ref_start),
                               rtol=2e-2, atol=2e-2)
    finite_k = np.isfinite(np.asarray(logits_end))
    finite_r = np.isfinite(np.asarray(ref_end))
    assert np.array_equal(finite_k, finite_r)
    np.testing.assert_allclose(np.asarray(logits_end)[finite_k],
                               np.asarray(ref_end)[finite_r],
                               rtol=2e-2, atol=2e-2)

    # TODO(synk): forward_hard / forward_loss / mentions-file filtering are
    # data-dependent host-side logic and are not part of forward(); omitted.
    print("KERNEL_OK")
</pallas_src>

<mosaic_0001>
module attributes {stable_mosaic.version = 11 : i64} {
  func.func @_start_head_kernel(%arg0: i32, %arg1: memref<16x768xbf16, #tpu.memory_space<vmem>>, %arg2: memref<768x128xbf16, #tpu.memory_space<vmem>>, %arg3: memref<1x128xf32, #tpu.memory_space<vmem>>, %arg4: memref<1x128xf32, #tpu.memory_space<vmem>>, %arg5: memref<1x128xf32, #tpu.memory_space<vmem>>, %arg6: memref<1x128xf32, #tpu.memory_space<vmem>>, %arg7: memref<1x128xbf16, #tpu.memory_space<vmem>>, %arg8: memref<1x1xf32, #tpu.memory_space<vmem>>, %arg9: memref<1x1x16xf32, #tpu.memory_space<vmem>>) attributes {dimension_semantics = [#tpu.dimension_semantics<parallel>], iteration_bounds = array<i64: 2>, scalar_prefetch = 0 : i64, scratch_operands = 0 : i64, tpu.core_type = #tpu.core_type<tc>, window_params = [{transform_indices = @transform_0, window_bounds = array<i64: 16, 768>}, {pipeline_mode = #tpu.pipeline_mode<synchronous>, transform_indices = @transform_1, window_bounds = array<i64: 768, 128>}, {pipeline_mode = #tpu.pipeline_mode<synchronous>, transform_indices = @transform_2, window_bounds = array<i64: 1, 128>}, {pipeline_mode = #tpu.pipeline_mode<synchronous>, transform_indices = @transform_3, window_bounds = array<i64: 1, 128>}, {pipeline_mode = #tpu.pipeline_mode<synchronous>, transform_indices = @transform_4, window_bounds = array<i64: 1, 128>}, {pipeline_mode = #tpu.pipeline_mode<synchronous>, transform_indices = @transform_5, window_bounds = array<i64: 1, 128>}, {pipeline_mode = #tpu.pipeline_mode<synchronous>, transform_indices = @transform_6, window_bounds = array<i64: 1, 128>}, {pipeline_mode = #tpu.pipeline_mode<synchronous>, transform_indices = @transform_7, window_bounds = array<i64: 1, 1>}, {transform_indices = @transform_8, window_bounds = array<i64: 1, 1, 16>}]} {
    %c0 = arith.constant 0 : index
    %c0_0 = arith.constant 0 : index
    %0 = vector.load %arg1[%c0, %c0_0] : memref<16x768xbf16, #tpu.memory_space<vmem>>, vector<16x768xbf16>
    %1 = arith.extf %0 : vector<16x768xbf16> to vector<16x768xf32>
    %cst = arith.constant dense<0.000000e+00> : vector<16xf32>
    %2 = vector.multi_reduction <add>, %1, %cst [1] : vector<16x768xf32> to vector<16xf32>
    %3 = vector.shape_cast %2 : vector<16xf32> to vector<16x1xf32>
    %4 = arith.mulf %1, %1 : vector<16x768xf32>
    %cst_1 = arith.constant dense<0.000000e+00> : vector<16xf32>
    %5 = vector.multi_reduction <add>, %4, %cst_1 [1] : vector<16x768xf32> to vector<16xf32>
    %6 = vector.shape_cast %5 : vector<16xf32> to vector<16x1xf32>
    %cst_2 = arith.constant 0.00130208337 : f32
    %7 = vector.broadcast %cst_2 : f32 to vector<16x1xf32>
    %8 = arith.mulf %3, %7 : vector<16x1xf32>
    %cst_3 = arith.constant 0.00130208337 : f32
    %9 = vector.broadcast %cst_3 : f32 to vector<16x1xf32>
    %10 = arith.mulf %6, %9 : vector<16x1xf32>
    %11 = arith.mulf %8, %8 : vector<16x1xf32>
    %12 = arith.subf %10, %11 : vector<16x1xf32>
    %cst_4 = arith.constant 0.000000e+00 : f32
    %13 = vector.broadcast %cst_4 : f32 to vector<16x1xf32>
    %14 = arith.maximumf %12, %13 : vector<16x1xf32>
    %cst_5 = arith.constant 9.99999974E-6 : f32
    %15 = vector.broadcast %cst_5 : f32 to vector<16x1xf32>
    %16 = arith.addf %14, %15 : vector<16x1xf32>
    %17 = math.rsqrt %16 : vector<16x1xf32>
    %c0_6 = arith.constant 0 : index
    %c0_7 = arith.constant 0 : index
    %18 = vector.load %arg2[%c0_6, %c0_7] : memref<768x128xbf16, #tpu.memory_space<vmem>>, vector<768x128xbf16>
    %cst_8 = arith.constant dense<0.000000e+00> : vector<16x128xf32>
    %19 = tpu.matmul %0, %18, %cst_8 {dimension_numbers = #tpu.dot_dimension_numbers<[1], [0], [0], [1], [0, 0, 1, 1], [], []>} : vector<16x768xbf16>, vector<768x128xbf16>, vector<16x128xf32> -> vector<16x128xf32>
    %20 = vector.broadcast %17 : vector<16x1xf32> to vector<16x128xf32>
    %21 = arith.mulf %20, %19 : vector<16x128xf32>
    %22 = arith.mulf %8, %17 : vector<16x1xf32>
    %c0_9 = arith.constant 0 : index
    %c0_10 = arith.constant 0 : index
    %23 = vector.load %arg3[%c0_9, %c0_10] : memref<1x128xf32, #tpu.memory_space<vmem>>, vector<1x128xf32>
    %24 = vector.broadcast %22 : vector<16x1xf32> to vector<16x128xf32>
    %25 = vector.broadcast %23 : vector<1x128xf32> to vector<16x128xf32>
    %26 = arith.mulf %24, %25 : vector<16x128xf32>
    %27 = arith.subf %21, %26 : vector<16x128xf32>
    %c0_11 = arith.constant 0 : index
    %c0_12 = arith.constant 0 : index
    %28 = vector.load %arg4[%c0_11, %c0_12] : memref<1x128xf32, #tpu.memory_space<vmem>>, vector<1x128xf32>
    %29 = vector.broadcast %28 : vector<1x128xf32> to vector<16x128xf32>
    %30 = arith.addf %27, %29 : vector<16x128xf32>
    %cst_13 = arith.constant 0.000000e+00 : f32
    %31 = vector.broadcast %cst_13 : f32 to vector<16x128xf32>
    %32 = arith.maximumf %30, %31 : vector<16x128xf32>
    %cst_14 = arith.constant dense<0.000000e+00> : vector<16xf32>
    %33 = vector.multi_reduction <add>, %32, %cst_14 [1] : vector<16x128xf32> to vector<16xf32>
    %34 = vector.shape_cast %33 : vector<16xf32> to vector<16x1xf32>
    %cst_15 = arith.constant 1.280000e+02 : f32
    %35 = vector.broadcast %cst_15 : f32 to vector<16x1xf32>
    %36 = arith.divf %34, %35 : vector<16x1xf32>
    %37 = vector.broadcast %36 : vector<16x1xf32> to vector<16x128xf32>
    %38 = arith.subf %32, %37 : vector<16x128xf32>
    %39 = arith.mulf %38, %38 : vector<16x128xf32>
    %cst_16 = arith.constant dense<0.000000e+00> : vector<16xf32>
    %40 = vector.multi_reduction <add>, %39, %cst_16 [1] : vector<16x128xf32> to vector<16xf32>
    %41 = vector.shape_cast %40 : vector<16xf32> to vector<16x1xf32>
    %cst_17 = arith.constant 1.280000e+02 : f32
    %42 = vector.broadcast %cst_17 : f32 to vector<16x1xf32>
    %43 = arith.divf %41, %42 : vector<16x1xf32>
    %cst_18 = arith.constant 0.000000e+00 : f32
    %44 = vector.broadcast %cst_18 : f32 to vector<16x1xf32>
    %45 = arith.maximumf %43, %44 : vector<16x1xf32>
    %cst_19 = arith.constant 9.99999974E-6 : f32
    %46 = vector.broadcast %cst_19 : f32 to vector<16x1xf32>
    %47 = arith.addf %45, %46 : vector<16x1xf32>
    %48 = math.rsqrt %47 : vector<16x1xf32>
    %49 = vector.broadcast %48 : vector<16x1xf32> to vector<16x128xf32>
    %50 = arith.mulf %38, %49 : vector<16x128xf32>
    %c0_20 = arith.constant 0 : index
    %c0_21 = arith.constant 0 : index
    %51 = vector.load %arg5[%c0_20, %c0_21] : memref<1x128xf32, #tpu.memory_space<vmem>>, vector<1x128xf32>
    %52 = vector.broadcast %51 : vector<1x128xf32> to vector<16x128xf32>
    %53 = arith.mulf %50, %52 : vector<16x128xf32>
    %c0_22 = arith.constant 0 : index
    %c0_23 = arith.constant 0 : index
    %54 = vector.load %arg6[%c0_22, %c0_23] : memref<1x128xf32, #tpu.memory_space<vmem>>, vector<1x128xf32>
    %55 = vector.broadcast %54 : vector<1x128xf32> to vector<16x128xf32>
    %56 = arith.addf %53, %55 : vector<16x128xf32>
    %c0_24 = arith.constant 0 : index
    %c0_25 = arith.constant 0 : index
    %57 = vector.load %arg7[%c0_24, %c0_25] : memref<1x128xbf16, #tpu.memory_space<vmem>>, vector<1x128xbf16>
    %58 = arith.truncf %56 : vector<16x128xf32> to vector<16x128xbf16>
    %cst_26 = arith.constant dense<0.000000e+00> : vector<1x16xf32>
    %59 = tpu.matmul %57, %58, %cst_26 {dimension_numbers = #tpu.dot_dimension_numbers<[1], [1], [0], [0], [0, 0, 1, 0], [], []>} : vector<1x128xbf16>, vector<16x128xbf16>, vector<1x16xf32> -> vector<1x16xf32>
    %c0_27 = arith.constant 0 : index
    %c0_28 = arith.constant 0 : index
    %60 = vector.load %arg8[%c0_27, %c0_28] : memref<1x1xf32, #tpu.memory_space<vmem>>, vector<1x1xf32>
    %61 = vector.broadcast %60 : vector<1x1xf32> to vector<1x16xf32>
    %62 = arith.addf %59, %61 : vector<1x16xf32>
    %63 = vector.shape_cast %62 : vector<1x16xf32> to vector<1x1x16xf32>
    %c0_29 = arith.constant 0 : index
    %c0_30 = arith.constant 0 : index
    %c0_31 = arith.constant 0 : index
    %64 = vector.load %arg9[%c0_29, %c0_30, %c0_31] : memref<1x1x16xf32, #tpu.memory_space<vmem>>, vector<1x1x16xf32>
    tpu.vector_store %arg9[%c0_29, %c0_30, %c0_31], %63 {strides = array<i32>} : memref<1x1x16xf32, #tpu.memory_space<vmem>>, vector<1x1x16xf32>,
    return
  }
  func.func @transform_0(%arg0: i32) -> (i32, i32) {
    %c0_i32 = arith.constant 0 : i32
    %c0_i32_0 = arith.constant 0 : i32
    return %arg0, %c0_i32 : i32, i32
  }
  func.func @transform_1(%arg0: i32) -> (i32, i32) {
    %c0_i32 = arith.constant 0 : i32
    %c0_i32_0 = arith.constant 0 : i32
    %c0_i32_1 = arith.constant 0 : i32
    return %c0_i32, %c0_i32_0 : i32, i32
  }
  func.func @transform_2(%arg0: i32) -> (i32, i32) {
    %c0_i32 = arith.constant 0 : i32
    %c0_i32_0 = arith.constant 0 : i32
    %c0_i32_1 = arith.constant 0 : i32
    return %c0_i32, %c0_i32_0 : i32, i32
  }
  func.func @transform_3(%arg0: i32) -> (i32, i32) {
    %c0_i32 = arith.constant 0 : i32
    %c0_i32_0 = arith.constant 0 : i32
    %c0_i32_1 = arith.constant 0 : i32
    return %c0_i32, %c0_i32_0 : i32, i32
  }
  func.func @transform_4(%arg0: i32) -> (i32, i32) {
    %c0_i32 = arith.constant 0 : i32
    %c0_i32_0 = arith.constant 0 : i32
    %c0_i32_1 = arith.constant 0 : i32
    return %c0_i32, %c0_i32_0 : i32, i32
  }
  func.func @transform_5(%arg0: i32) -> (i32, i32) {
    %c0_i32 = arith.constant 0 : i32
    %c0_i32_0 = arith.constant 0 : i32
    %c0_i32_1 = arith.constant 0 : i32
    return %c0_i32, %c0_i32_0 : i32, i32
  }
  func.func @transform_6(%arg0: i32) -> (i32, i32) {
    %c0_i32 = arith.constant 0 : i32
    %c0_i32_0 = arith.constant 0 : i32
    %c0_i32_1 = arith.constant 0 : i32
    return %c0_i32, %c0_i32_0 : i32, i32
  }
  func.func @transform_7(%arg0: i32) -> (i32, i32) {
    %c0_i32 = arith.constant 0 : i32
    %c0_i32_0 = arith.constant 0 : i32
    %c0_i32_1 = arith.constant 0 : i32
    return %c0_i32, %c0_i32_0 : i32, i32
  }
  func.func @transform_8(%arg0: i32) -> (i32, i32, i32) {
    %c0_i32 = arith.constant 0 : i32
    %c0_i32_0 = arith.constant 0 : i32
    %c0_i32_1 = arith.constant 0 : i32
    return %arg0, %c0_i32, %c0_i32_0 : i32, i32, i32
  }
}

module attributes {stable_mosaic.version = 11 : i64} {
  func.func @_end_head_kernel(%arg0: i32, %arg1: memref<64x768xbf16, #tpu.memory_space<vmem>>, %arg2: memref<16x768xbf16, #tpu.memory_space<vmem>>, %arg3: memref<768x128xbf16, #tpu.memory_space<vmem>>, %arg4: memref<768x128xbf16, #tpu.memory_space<vmem>>, %arg5: memref<1x128xf32, #tpu.memory_space<vmem>>, %arg6: memref<1x128xf32, #tpu.memory_space<vmem>>, %arg7: memref<1x128xf32, #tpu.memory_space<vmem>>, %arg8: memref<1x128xf32, #tpu.memory_space<vmem>>, %arg9: memref<1x128xbf16, #tpu.memory_space<vmem>>, %arg10: memref<1x1xf32, #tpu.memory_space<vmem>>, %arg11: memref<1x1x64xf32, #tpu.memory_space<vmem>>) attributes {dimension_semantics = [#tpu.dimension_semantics<parallel>], iteration_bounds = array<i64: 1>, scalar_prefetch = 0 : i64, scratch_operands = 0 : i64, tpu.core_type = #tpu.core_type<tc>, window_params = [{transform_indices = @transform_0, window_bounds = array<i64: 64, 768>}, {transform_indices = @transform_1, window_bounds = array<i64: 16, 768>}, {pipeline_mode = #tpu.pipeline_mode<synchronous>, transform_indices = @transform_2, window_bounds = array<i64: 768, 128>}, {pipeline_mode = #tpu.pipeline_mode<synchronous>, transform_indices = @transform_3, window_bounds = array<i64: 768, 128>}, {pipeline_mode = #tpu.pipeline_mode<synchronous>, transform_indices = @transform_4, window_bounds = array<i64: 1, 128>}, {pipeline_mode = #tpu.pipeline_mode<synchronous>, transform_indices = @transform_5, window_bounds = array<i64: 1, 128>}, {pipeline_mode = #tpu.pipeline_mode<synchronous>, transform_indices = @transform_6, window_bounds = array<i64: 1, 128>}, {pipeline_mode = #tpu.pipeline_mode<synchronous>, transform_indices = @transform_7, window_bounds = array<i64: 1, 128>}, {pipeline_mode = #tpu.pipeline_mode<synchronous>, transform_indices = @transform_8, window_bounds = array<i64: 1, 128>}, {pipeline_mode = #tpu.pipeline_mode<synchronous>, transform_indices = @transform_9, window_bounds = array<i64: 1, 1>}, {transform_indices = @transform_10, window_bounds = array<i64: 1, 1, 64>}]} {
    %c0 = arith.constant 0 : index
    %c0_0 = arith.constant 0 : index
    %0 = vector.load %arg1[%c0, %c0_0] : memref<64x768xbf16, #tpu.memory_space<vmem>>, vector<64x768xbf16>
    %c0_1 = arith.constant 0 : index
    %c0_2 = arith.constant 0 : index
    %1 = vector.load %arg2[%c0_1, %c0_2] : memref<16x768xbf16, #tpu.memory_space<vmem>>, vector<16x768xbf16>
    %2 = arith.extf %0 : vector<64x768xbf16> to vector<64x768xf32>
    %3 = arith.extf %1 : vector<16x768xbf16> to vector<16x768xf32>
    %c0_3 = arith.constant 0 : index
    %c0_4 = arith.constant 0 : index
    %4 = vector.load %arg3[%c0_3, %c0_4] : memref<768x128xbf16, #tpu.memory_space<vmem>>, vector<768x128xbf16>
    %cst = arith.constant dense<0.000000e+00> : vector<64x128xf32>
    %5 = tpu.matmul %0, %4, %cst {dimension_numbers = #tpu.dot_dimension_numbers<[1], [0], [0], [1], [0, 0, 1, 1], [], []>} : vector<64x768xbf16>, vector<768x128xbf16>, vector<64x128xf32> -> vector<64x128xf32>
    %c0_5 = arith.constant 0 : index
    %c0_6 = arith.constant 0 : index
    %6 = vector.load %arg4[%c0_5, %c0_6] : memref<768x128xbf16, #tpu.memory_space<vmem>>, vector<768x128xbf16>
    %cst_7 = arith.constant dense<0.000000e+00> : vector<16x128xf32>
    %7 = tpu.matmul %1, %6, %cst_7 {dimension_numbers = #tpu.dot_dimension_numbers<[1], [0], [0], [1], [0, 0, 1, 1], [], []>} : vector<16x768xbf16>, vector<768x128xbf16>, vector<16x128xf32> -> vector<16x128xf32>
    %cst_8 = arith.constant dense<0.000000e+00> : vector<64xf32>
    %8 = vector.multi_reduction <add>, %2, %cst_8 [1] : vector<64x768xf32> to vector<64xf32>
    %9 = vector.shape_cast %8 : vector<64xf32> to vector<64x1xf32>
    %10 = arith.mulf %2, %2 : vector<64x768xf32>
    %cst_9 = arith.constant dense<0.000000e+00> : vector<64xf32>
    %11 = vector.multi_reduction <add>, %10, %cst_9 [1] : vector<64x768xf32> to vector<64xf32>
    %12 = vector.shape_cast %11 : vector<64xf32> to vector<64x1xf32>
    %cst_10 = arith.constant dense<0.000000e+00> : vector<16xf32>
    %13 = vector.multi_reduction <add>, %3, %cst_10 [1] : vector<16x768xf32> to vector<16xf32>
    %14 = vector.shape_cast %13 : vector<16xf32> to vector<16x1xf32>
    %15 = arith.mulf %3, %3 : vector<16x768xf32>
    %cst_11 = arith.constant dense<0.000000e+00> : vector<16xf32>
    %16 = vector.multi_reduction <add>, %15, %cst_11 [1] : vector<16x768xf32> to vector<16xf32>
    %17 = vector.shape_cast %16 : vector<16xf32> to vector<16x1xf32>
    %18 = tpu.concatenate %7, %7, %7, %7 in 0 : vector<16x128xf32>, vector<16x128xf32>, vector<16x128xf32>, vector<16x128xf32> -> vector<64x128xf32>
    %19 = tpu.concatenate %14, %14, %14, %14 in 0 : vector<16x1xf32>, vector<16x1xf32>, vector<16x1xf32>, vector<16x1xf32> -> vector<64x1xf32>
    %20 = tpu.concatenate %17, %17, %17, %17 in 0 : vector<16x1xf32>, vector<16x1xf32>, vector<16x1xf32>, vector<16x1xf32> -> vector<64x1xf32>
    %21 = arith.addf %19, %9 : vector<64x1xf32>
    %cst_12 = arith.constant 6.51041686E-4 : f32
    %22 = vector.broadcast %cst_12 : f32 to vector<64x1xf32>
    %23 = arith.mulf %21, %22 : vector<64x1xf32>
    %24 = arith.addf %20, %12 : vector<64x1xf32>
    %cst_13 = arith.constant 6.51041686E-4 : f32
    %25 = vector.broadcast %cst_13 : f32 to vector<64x1xf32>
    %26 = arith.mulf %24, %25 : vector<64x1xf32>
    %27 = arith.mulf %23, %23 : vector<64x1xf32>
    %28 = arith.subf %26, %27 : vector<64x1xf32>
    %cst_14 = arith.constant 0.000000e+00 : f32
    %29 = vector.broadcast %cst_14 : f32 to vector<64x1xf32>
    %30 = arith.maximumf %28, %29 : vector<64x1xf32>
    %cst_15 = arith.constant 9.99999974E-6 : f32
    %31 = vector.broadcast %cst_15 : f32 to vector<64x1xf32>
    %32 = arith.addf %30, %31 : vector<64x1xf32>
    %33 = math.rsqrt %32 : vector<64x1xf32>
    %34 = arith.addf %18, %5 : vector<64x128xf32>
    %35 = vector.broadcast %33 : vector<64x1xf32> to vector<64x128xf32>
    %36 = arith.mulf %35, %34 : vector<64x128xf32>
    %37 = arith.mulf %23, %33 : vector<64x1xf32>
    %c0_16 = arith.constant 0 : index
    %c0_17 = arith.constant 0 : index
    %38 = vector.load %arg5[%c0_16, %c0_17] : memref<1x128xf32, #tpu.memory_space<vmem>>, vector<1x128xf32>
    %39 = vector.broadcast %37 : vector<64x1xf32> to vector<64x128xf32>
    %40 = vector.broadcast %38 : vector<1x128xf32> to vector<64x128xf32>
    %41 = arith.mulf %39, %40 : vector<64x128xf32>
    %42 = arith.subf %36, %41 : vector<64x128xf32>
    %c0_18 = arith.constant 0 : index
    %c0_19 = arith.constant 0 : index
    %43 = vector.load %arg6[%c0_18, %c0_19] : memref<1x128xf32, #tpu.memory_space<vmem>>, vector<1x128xf32>
    %44 = vector.broadcast %43 : vector<1x128xf32> to vector<64x128xf32>
    %45 = arith.addf %42, %44 : vector<64x128xf32>
    %cst_20 = arith.constant 0.000000e+00 : f32
    %46 = vector.broadcast %cst_20 : f32 to vector<64x128xf32>
    %47 = arith.maximumf %45, %46 : vector<64x128xf32>
    %cst_21 = arith.constant dense<0.000000e+00> : vector<64xf32>
    %48 = vector.multi_reduction <add>, %47, %cst_21 [1] : vector<64x128xf32> to vector<64xf32>
    %49 = vector.shape_cast %48 : vector<64xf32> to vector<64x1xf32>
    %cst_22 = arith.constant 1.280000e+02 : f32
    %50 = vector.broadcast %cst_22 : f32 to vector<64x1xf32>
    %51 = arith.divf %49, %50 : vector<64x1xf32>
    %52 = vector.broadcast %51 : vector<64x1xf32> to vector<64x128xf32>
    %53 = arith.subf %47, %52 : vector<64x128xf32>
    %54 = arith.mulf %53, %53 : vector<64x128xf32>
    %cst_23 = arith.constant dense<0.000000e+00> : vector<64xf32>
    %55 = vector.multi_reduction <add>, %54, %cst_23 [1] : vector<64x128xf32> to vector<64xf32>
    %56 = vector.shape_cast %55 : vector<64xf32> to vector<64x1xf32>
    %cst_24 = arith.constant 1.280000e+02 : f32
    %57 = vector.broadcast %cst_24 : f32 to vector<64x1xf32>
    %58 = arith.divf %56, %57 : vector<64x1xf32>
    %cst_25 = arith.constant 0.000000e+00 : f32
    %59 = vector.broadcast %cst_25 : f32 to vector<64x1xf32>
    %60 = arith.maximumf %58, %59 : vector<64x1xf32>
    %cst_26 = arith.constant 9.99999974E-6 : f32
    %61 = vector.broadcast %cst_26 : f32 to vector<64x1xf32>
    %62 = arith.addf %60, %61 : vector<64x1xf32>
    %63 = math.rsqrt %62 : vector<64x1xf32>
    %64 = vector.broadcast %63 : vector<64x1xf32> to vector<64x128xf32>
    %65 = arith.mulf %53, %64 : vector<64x128xf32>
    %c0_27 = arith.constant 0 : index
    %c0_28 = arith.constant 0 : index
    %66 = vector.load %arg7[%c0_27, %c0_28] : memref<1x128xf32, #tpu.memory_space<vmem>>, vector<1x128xf32>
    %67 = vector.broadcast %66 : vector<1x128xf32> to vector<64x128xf32>
    %68 = arith.mulf %65, %67 : vector<64x128xf32>
    %c0_29 = arith.constant 0 : index
    %c0_30 = arith.constant 0 : index
    %69 = vector.load %arg8[%c0_29, %c0_30] : memref<1x128xf32, #tpu.memory_space<vmem>>, vector<1x128xf32>
    %70 = vector.broadcast %69 : vector<1x128xf32> to vector<64x128xf32>
    %71 = arith.addf %68, %70 : vector<64x128xf32>
    %c0_31 = arith.constant 0 : index
    %c0_32 = arith.constant 0 : index
    %72 = vector.load %arg9[%c0_31, %c0_32] : memref<1x128xbf16, #tpu.memory_space<vmem>>, vector<1x128xbf16>
    %73 = arith.truncf %71 : vector<64x128xf32> to vector<64x128xbf16>
    %cst_33 = arith.constant dense<0.000000e+00> : vector<1x64xf32>
    %74 = tpu.matmul %72, %73, %cst_33 {dimension_numbers = #tpu.dot_dimension_numbers<[1], [1], [0], [0], [0, 0, 1, 0], [], []>} : vector<1x128xbf16>, vector<64x128xbf16>, vector<1x64xf32> -> vector<1x64xf32>
    %c0_34 = arith.constant 0 : index
    %c0_35 = arith.constant 0 : index
    %75 = vector.load %arg10[%c0_34, %c0_35] : memref<1x1xf32, #tpu.memory_space<vmem>>, vector<1x1xf32>
    %76 = vector.broadcast %75 : vector<1x1xf32> to vector<1x64xf32>
    %77 = arith.addf %74, %76 : vector<1x64xf32>
    %78 = vector.shape_cast %77 : vector<1x64xf32> to vector<1x1x64xf32>
    %c0_36 = arith.constant 0 : index
    %c0_37 = arith.constant 0 : index
    %c0_38 = arith.constant 0 : index
    %79 = vector.load %arg11[%c0_36, %c0_37, %c0_38] : memref<1x1x64xf32, #tpu.memory_space<vmem>>, vector<1x1x64xf32>
    tpu.vector_store %arg11[%c0_36, %c0_37, %c0_38], %78 {strides = array<i32>} : memref<1x1x64xf32, #tpu.memory_space<vmem>>, vector<1x1x64xf32>,
    return
  }
  func.func @transform_0(%arg0: i32) -> (i32, i32) {
    %c0_i32 = arith.constant 0 : i32
    %c0_i32_0 = arith.constant 0 : i32
    return %arg0, %c0_i32 : i32, i32
  }
  func.func @transform_1(%arg0: i32) -> (i32, i32) {
    %c0_i32 = arith.constant 0 : i32
    %c0_i32_0 = arith.constant 0 : i32
    return %arg0, %c0_i32 : i32, i32
  }
  func.func @transform_2(%arg0: i32) -> (i32, i32) {
    %c0_i32 = arith.constant 0 : i32
    %c0_i32_0 = arith.constant 0 : i32
    %c0_i32_1 = arith.constant 0 : i32
    return %c0_i32, %c0_i32_0 : i32, i32
  }
  func.func @transform_3(%arg0: i32) -> (i32, i32) {
    %c0_i32 = arith.constant 0 : i32
    %c0_i32_0 = arith.constant 0 : i32
    %c0_i32_1 = arith.constant 0 : i32
    return %c0_i32, %c0_i32_0 : i32, i32
  }
  func.func @transform_4(%arg0: i32) -> (i32, i32) {
    %c0_i32 = arith.constant 0 : i32
    %c0_i32_0 = arith.constant 0 : i32
    %c0_i32_1 = arith.constant 0 : i32
    return %c0_i32, %c0_i32_0 : i32, i32
  }
  func.func @transform_5(%arg0: i32) -> (i32, i32) {
    %c0_i32 = arith.constant 0 : i32
    %c0_i32_0 = arith.constant 0 : i32
    %c0_i32_1 = arith.constant 0 : i32
    return %c0_i32, %c0_i32_0 : i32, i32
  }
  func.func @transform_6(%arg0: i32) -> (i32, i32) {
    %c0_i32 = arith.constant 0 : i32
    %c0_i32_0 = arith.constant 0 : i32
    %c0_i32_1 = arith.constant 0 : i32
    return %c0_i32, %c0_i32_0 : i32, i32
  }
  func.func @transform_7(%arg0: i32) -> (i32, i32) {
    %c0_i32 = arith.constant 0 : i32
    %c0_i32_0 = arith.constant 0 : i32
    %c0_i32_1 = arith.constant 0 : i32
    return %c0_i32, %c0_i32_0 : i32, i32
  }
  func.func @transform_8(%arg0: i32) -> (i32, i32) {
    %c0_i32 = arith.constant 0 : i32
    %c0_i32_0 = arith.constant 0 : i32
    %c0_i32_1 = arith.constant 0 : i32
    return %c0_i32, %c0_i32_0 : i32, i32
  }
  func.func @transform_9(%arg0: i32) -> (i32, i32) {
    %c0_i32 = arith.constant 0 : i32
    %c0_i32_0 = arith.constant 0 : i32
    %c0_i32_1 = arith.constant 0 : i32
    return %c0_i32, %c0_i32_0 : i32, i32
  }
  func.func @transform_10(%arg0: i32) -> (i32, i32, i32) {
    %c0_i32 = arith.constant 0 : i32
    %c0_i32_0 = arith.constant 0 : i32
    %c0_i32_1 = arith.constant 0 : i32
    return %arg0, %c0_i32, %c0_i32_0 : i32, i32, i32
  }
}

</mosaic_0001>

<bundles_post_ra>
// kernel: entity_detection_forward.2
= control target key start
LH: loop header
LB: loop body
LE: loop exit
PB: predicated region body
PF: predicated region fallthrough
CT: control target
= control target key end

     0   :  { %s1737_s0 = inlined_call_operand.vmem [shape: bf16[32,768], index: 0, kind: input, shape index: {}]   ;;  %s1738_s1 = inlined_call_operand.vmem [shape: bf16[768,128], index: 1, kind: input, shape index: {}]   ;;  %s1739_s2 = inlined_call_operand.vmem [shape: f32[1,128], index: 2, kind: input, shape index: {}]   ;;  %s1740_s3 = inlined_call_operand.vmem [shape: f32[1,128], index: 3, kind: input, shape index: {}]   ;;  %s1741_s4 = inlined_call_operand.vmem [shape: f32[1,128], index: 4, kind: input, shape index: {}]   ;;  %s1742_s5 = inlined_call_operand.vmem [shape: f32[1,128], index: 5, kind: input, shape index: {}]   ;;  %s1743_s6 = inlined_call_operand.vmem [shape: bf16[1,128], index: 6, kind: input, shape index: {}]   ;;  %s1744_s7 = inlined_call_operand.<no memory space> [shape: f32[1,1], index: 7, kind: input, shape index: {}]   ;;  %s1745_s8 = inlined_call_operand.hbm [shape: f32[2,1,16], index: 8, kind: output, shape index: {}]  }
   0x1   :  { %v13_v0 = vstv %s1744_s7 }
   0x2   :  { %14 = vst [vmem:[#allocation2] sm:$0x1] %v13_v0 }
   0x3   :  { %15 = vsyncpa [#allocation4], 0 }
   0x4   :  { %17 = vsyncpa [#allocation4 + $0x1], 0  ;;  %s1472_s29 = smov 0   ;;  %s1474_s30 = smov 0  }
   0x5   :  { %s1476_s9 = smov 0   ;;  %s1478_s10 = smov 0  }
   0x6 LB: > { %s1493_s7 = sadd.s32 4294967295, %s1418_s10   ;;  %s1111_s11 = sadd.s32 4294967294, %s1418_s10   ;;  %s1418_s10 = sphi %s1478_s10, %s1751_s10   ;;  %s1414_s9 = sphi %s1476_s9, %s1750_s9   ;;  %s1410_s30 = sphi %s1474_s30, %s1749_s30   ;;  %s1406_s29 = sphi %s1472_s29, %s1748_s29  }
   0x7   : > { %s1497_s12 = sadd.s32 1, %s1418_s10   ;;  %s203_s13 = sadd.s32 1, %s1414_s9 }
   0x8   : > { %s200_s14 = ssub.s32 %s1418_s10, %s1497_s12  ;;  %p213_p0 = scmp.ne.s32.totalorder %s1414_s9, %s1410_s30 }
   0x9   : > { %p201_p1 = scmp.eq.s32.totalorder %s200_s14, 0  ;;  %p214_p2 = scmp.eq.s32.totalorder %s1493_s7, 1 }
   0xa   : > { %p219_p3 = scmp.ne.s32.totalorder %s1410_s30, %s1406_s29  ;;  %p220_p4 = scmp.eq.s32.totalorder %s1111_s11, 1 }
   0xb   : > { %s1508_s15 = scalar_select %p201_p1, %s1414_s9, %s203_s13  }
   0xc   : > { %p1510_p5 = por %p214_p2, %p213_p0  ;;  %p1514_p6 = por %p220_p4, %p219_p3 }
   0xd   : > { %p1114_p7 = scmp.ge.s32.totalorder %s1418_s10, 1  ;;  %p269_p8 = scmp.lt.s32.totalorder %s1418_s10, 3 }
   0xf   : > { %p270_p9 = pnand %p1114_p7, %p269_p8 }
  0x10   : > { %s1115_s20 = sshll.u32 (!%p270_p9), %s1493_s7, 1  ;;  %s301_s19 = sand.u32 (!%p270_p9), 1, %s1410_s30  }
  0x11   : > { %273 = sbr.rel (%p270_p9) target bundleno = 825 (0x339), region = 52  ;;  %p304_p10 = scmp.lt.s32.totalorder (!%p270_p9), %s1115_s20, 3 }
  0x12   : > { %s1175_s21 = sshll.u32 (!%p270_p9), %s1493_s7, 4  ;;  %s302_s22 = scalar_lea.vmem (!%p270_p9), [#allocation3], %s301_s19 }
  0x13   : > { %s1056_s23 = sshll.u32 (!%p270_p9), %s302_s22, 4  ;;  %s1044_s26 = scalar_lea.sflag (!%p270_p9), [#allocation4], %s301_s19  ;;  %s1698_s23 = int_to_ptr.vmem [resolvable:$true] %s1056_s23 }
  0x14   : > { %s1358_s7 = scalar_lea.vmem (!%p270_p9), %s1698_s23, 16 }
  0x15   : > { %p1359_p11 = scmp.ne.s32.totalorder (!%p270_p9), %s1698_s23, %s1358_s7 }
  0x16   : > { %v1296_v1 = vld [vmem:[%s1738_s1 + $0x78] sm:$0xff]   ;;  %v1300_v5 = vld [vmem:[%s1738_s1 + $0x70] sm:$0xff]   ;;  %v1304_v9 = vld [vmem:[%s1738_s1 + $0x68] sm:$0xff]   ;;  %s1753_s20 = smov (!%p304_p10, %s1115_s20), 3  ;;  %vm1421_vm0 = vmmov 0   ;;  %vm1041_vm1 = vcmask 122880  }
  0x17   : > { %v1297_v2 = vld [vmem:[%s1738_s1 + $0xf8] sm:$0xff]   ;;  %1178 = vmatprep.subr.bf16.mxu0 %v1296_v1  ;;  %v1301_v6 = vld [vmem:[%s1738_s1 + $0xf0] sm:$0xff]   ;;  %v1305_v10 = vld [vmem:[%s1738_s1 + $0xe8] sm:$0xff]   ;;  %s1252_s13 = smul.u32 24, %s1753_s20  ;;  %s1696_s20 = scalar_lea.hbm %s1745_s8, %s1175_s21 }
  0x18   : > { %v1298_v3 = vld [vmem:[%s1738_s1 + $0x38] sm:$0xff]   ;;  %1200 = vmatprep.subr.bf16.mxu1 %v1297_v2  ;;  %v1302_v7 = vld [vmem:[%s1738_s1 + $0x30] sm:$0xff]   ;;  %v1306_v11 = vld [vmem:[%s1738_s1 + $0x28] sm:$0xff]   ;;  %p1360_p12 = pnand %p1359_p11, %p1510_p5 }
  0x19   : > { %v1299_v4 = vld [vmem:[%s1738_s1 + $0xb8] sm:$0xff]   ;;  %1179 = vmatpush3.bf16.msra.mxu0 %v1298_v3  ;;  %v1303_v8 = vld [vmem:[%s1738_s1 + $0xb0] sm:$0xff]   ;;  %v1307_v12 = vld [vmem:[%s1738_s1 + $0xa8] sm:$0xff]   ;;  %s1614_s27 = scalar_lea.vmem %s1737_s0, %s1252_s13 }
  0x1a   : > { %1201 = vmatpush3.bf16.msra.mxu1 %v1299_v4  ;;  %1180 = vmatprep.subr.bf16.mxu0 %v1300_v5  ;;  %v1308_v13 = vld [vmem:[%s1738_s1 + $0x60] sm:$0xff]   ;;  %v1312_v17 = vld [vmem:[%s1738_s1 + $0x58] sm:$0xff]   ;;  %v1316_v21 = vld [vmem:[%s1738_s1 + $0x50] sm:$0xff]   ;;  %p1361_p13 = pneg %p1360_p12 }
  0x1b   : > { %1202 = vmatprep.subr.bf16.mxu1 %v1301_v6  ;;  %v1309_v14 = vld [vmem:[%s1738_s1 + $0xe0] sm:$0xff]   ;;  %v1313_v18 = vld [vmem:[%s1738_s1 + $0xd8] sm:$0xff]   ;;  %v1317_v22 = vld [vmem:[%s1738_s1 + $0xd0] sm:$0xff]  }
  0x1c   : > { %v1310_v15 = vld [vmem:[%s1738_s1 + $0x20] sm:$0xff]   ;;  %v1314_v19 = vld [vmem:[%s1738_s1 + $0x18] sm:$0xff]   ;;  %v1318_v23 = vld [vmem:[%s1738_s1 + $0x10] sm:$0xff]  }
  0x1d   : > { %1181 = vmatpush3.bf16.msra.mxu0 %v1302_v7  ;;  %v1311_v16 = vld [vmem:[%s1738_s1 + $0xa0] sm:$0xff]   ;;  %v1315_v20 = vld [vmem:[%s1738_s1 + $0x98] sm:$0xff]   ;;  %v1319_v24 = vld [vmem:[%s1738_s1 + $0x90] sm:$0xff]  }
  0x1e   : > { %1203 = vmatpush3.bf16.msra.mxu1 %v1303_v8  ;;  %1182 = vmatprep.subr.bf16.mxu0 %v1304_v9  ;;  %v1320_v25 = vld [vmem:[%s1738_s1 + $0x48] sm:$0xff]   ;;  %v1324_v29 = vld [vmem:[%s1738_s1 + $0x40] sm:$0xff]   ;;  %v314_v34 = vld [vmem:[%s1614_s27 + $0x18] sm:$0xff] }
  0x1f   : > { %1204 = vmatprep.subr.bf16.mxu1 %v1305_v10  ;;  %v1321_v26 = vld [vmem:[%s1738_s1 + $0xc8] sm:$0xff]   ;;  %v1325_v30 = vld [vmem:[%s1738_s1 + $0xc0] sm:$0xff]   ;;  %v1332_v42 = vld [vmem:[%s1738_s1 + $0x178] sm:$0xff]   ;;  %v323_v43 = vunpack.c.l.bf16 %v314_v34  ;;  %v324_v44 = vunpack.c.h.bf16 %v314_v34 }
  0x20   : > { %v1322_v27 = vld [vmem:[%s1738_s1 + $0x8] sm:$0xff]   ;;  %v1326_v31 = vld [vmem:[%s1738_s1] sm:$0xff]   ;;  %v1333_v46 = vld [vmem:[%s1738_s1 + $0x138] sm:$0xff]  }
  0x21   : > { %1183 = vmatpush3.bf16.msra.mxu0 %v1306_v11  ;;  %v1323_v28 = vld [vmem:[%s1738_s1 + $0x88] sm:$0xff]   ;;  %v1327_v32 = vld [vmem:[%s1738_s1 + $0x80] sm:$0xff]   ;;  %v1334_v47 = vld [vmem:[%s1738_s1 + $0x170] sm:$0xff]   ;;  %v349_v51 = vmul.f32 %v323_v43, %v323_v43  ;;  %v350_v52 = vmul.f32 %v324_v44, %v324_v44  ;;  %v336_v57 = vadd.f32 %v324_v44, %v323_v43 }
  0x22   : > { %1205 = vmatpush3.bf16.msra.mxu1 %v1307_v12  ;;  %1184 = vmatprep.subr.bf16.mxu0 %v1308_v13  ;;  %v311_v33 = vld [vmem:[%s1614_s27] sm:$0xff]  ;;  %v312_v35 = vld [vmem:[%s1614_s27 + $0x8] sm:$0xff]  ;;  %v1335_v54 = vld [vmem:[%s1738_s1 + $0x130] sm:$0xff]  }
  0x23   : > { %1206 = vmatprep.subr.bf16.mxu1 %v1309_v14  ;;  %v317_v36 = vunpack.c.l.bf16 %v311_v33  ;;  %v315_v37 = vld [vmem:[%s1614_s27 + $0x20] sm:$0xff]  ;;  %v318_v38 = vunpack.c.h.bf16 %v311_v33  ;;  %v1118_v39 = vcombine.high %v311_v33, %v314_v34  ;;  %v1117_v41 = vcombine.low %v311_v33, %v314_v34  ;;  %v1336_v55 = vld [vmem:[%s1738_s1 + $0x168] sm:$0xff]   ;;  %v1340_v9 = vld [vmem:[%s1738_s1 + $0x158] sm:$0xff]  }
  0x24   : > { %v1120_v40 = vcombine.high %v312_v35, %v315_v37  ;;  %v1119_v45 = vcombine.low %v312_v35, %v315_v37  ;;  %v319_v48 = vunpack.c.l.bf16 %v312_v35  ;;  %v325_v53 = vunpack.c.l.bf16 %v315_v37  ;;  %v1337_v61 = vld [vmem:[%s1738_s1 + $0x128] sm:$0xff]   ;;  %v1338_v1 = vld [vmem:[%s1738_s1 + $0x160] sm:$0xff]   ;;  %v313_v11 = vld [vmem:[%s1614_s27 + $0x10] sm:$0xff] }
  0x25   : > { %1185 = vmatpush3.bf16.msra.mxu0 %v1310_v15  ;;  %829 = vmatprep.mubr.bf16.mxu0 %v1118_v39  ;;  %v343_v49 = vmul.f32 %v317_v36, %v317_v36  ;;  %v344_v50 = vmul.f32 %v318_v38, %v318_v38  ;;  %v329_v56 = vadd.f32 %v318_v38, %v317_v36  ;;  %v320_v58 = vunpack.c.h.bf16 %v312_v35  ;;  %v1339_v6 = vld [vmem:[%s1738_s1 + $0x120] sm:$0xff]   ;;  %v316_v12 = vld [vmem:[%s1614_s27 + $0x28] sm:$0xff]  ;;  %s1423_s27 = smov [#allocation3]  }
  0x26   : > { %1207 = vmatpush3.bf16.msra.mxu1 %v1311_v16  ;;  %1186 = vmatprep.subr.bf16.mxu0 %v1312_v17  ;;  %v345_v59 = vmul.f32 %v319_v48, %v319_v48  ;;  %v326_v62 = vunpack.c.h.bf16 %v315_v37  ;;  %v351_v63 = vmul.f32 %v325_v53, %v325_v53  ;;  %v362_v0 = vadd.f32 %v350_v52, %v349_v51  ;;  %v1344_v33 = vld [vmem:[%s1738_s1 + $0x148] sm:$0xff]   ;;  %v1346_v38 = vld [vmem:[%s1738_s1 + $0x140] sm:$0xff]   ;;  %s1362_s28 = sshll.u32 %s1423_s27, 4  ;;  %s1363_s28 = int_to_ptr.vmem [resolvable:$false] %s1362_s28 }
  0x27   : > { %1208 = vmatprep.subr.bf16.mxu1 %v1313_v18  ;;  %870 = vmatprep.mubr.bf16.mxu1 %v1120_v40  ;;  %v355_v60 = vadd.f32 %v344_v50, %v343_v49  ;;  %v330_v2 = vadd.f32 %v329_v56, %v319_v48  ;;  %v337_v3 = vadd.f32 %v336_v57, %v325_v53  ;;  %v321_v15 = vunpack.c.l.bf16 %v313_v11  ;;  %v1341_v18 = vld [vmem:[%s1738_s1 + $0x118] sm:$0xff]   ;;  %v1345_v37 = vld [vmem:[%s1738_s1 + $0x108] sm:$0xff]   ;;  %v1347_v39 = vld [vmem:[%s1738_s1 + $0x100] sm:$0xff]   ;;  %s1364_s11 = scalar_lea.vmem %s1363_s28, 32  ;;  %p1365_p0 = scmp.lt.s32.totalorder %s1698_s23, %s1363_s28 }
  0x28   : > { %v346_v4 = vmul.f32 %v320_v58, %v320_v58  ;;  %v352_v7 = vmul.f32 %v326_v62, %v326_v62  ;;  %v363_v8 = vadd.f32 %v362_v0, %v351_v63  ;;  %v1122_v14 = vcombine.high %v313_v11, %v316_v12  ;;  %p1366_p1 = scmp.lt.s32.totalorder %s1364_s11, %s1358_s7 }
  0x29   : > { %1187 = vmatpush3.bf16.msra.mxu0 %v1314_v19  ;;  %v356_v5 = vadd.f32 %v355_v60, %v345_v59  ;;  %v331_v10 = vadd.f32 %v330_v2, %v320_v58  ;;  %v338_v13 = vadd.f32 %v337_v3, %v326_v62  ;;  %v322_v16 = vunpack.c.h.bf16 %v313_v11 }
  0x2a   : > { %1209 = vmatpush3.bf16.msra.mxu1 %v1315_v20  ;;  %1188 = vmatprep.subr.bf16.mxu0 %v1316_v21  ;;  %v327_v19 = vunpack.c.l.bf16 %v316_v12  ;;  %v328_v20 = vunpack.c.h.bf16 %v316_v12  ;;  %v364_v21 = vadd.f32 %v363_v8, %v352_v7  ;;  %v1121_v40 = vcombine.low %v313_v11, %v316_v12  ;;  %v1171_v11 = vld [vmem:[%s1739_s2] ss:$0 sm:$0xff]  ;;  %p1367_p2 = por %p1366_p1, %p1365_p0 }
  0x2b   : > { %1210 = vmatprep.subr.bf16.mxu1 %v1317_v22  ;;  %v357_v17 = vadd.f32 %v356_v5, %v346_v4  ;;  %v1342_v22 = vld [vmem:[%s1738_s1 + $0x150] sm:$0xff]  }
  0x2c   : > { %p1368_p3 = pnand %p1367_p2, %p1361_p13 }
  0x2d   : > { %1189 = vmatpush3.bf16.msra.mxu0 %v1318_v23  ;;  %v332_v23 = vadd.f32 %v331_v10, %v321_v15 }
  0x2e   : > { %1211 = vmatpush3.bf16.msra.mxu1 %v1319_v24  ;;  %1190 = vmatprep.subr.bf16.mxu0 %v1320_v25  ;;  %v347_v24 = vmul.f32 %v321_v15, %v321_v15  ;;  %v348_v25 = vmul.f32 %v322_v16, %v322_v16 }
  0x2f   : > { %1212 = vmatprep.subr.bf16.mxu1 %v1321_v26  ;;  %v339_v26 = vadd.f32 %v338_v13, %v327_v19 }
  0x31   : > { %1191 = vmatpush3.bf16.msra.mxu0 %v1322_v27  ;;  %v353_v27 = vmul.f32 %v327_v19, %v327_v19  ;;  %v340_v35 = vadd.f32 %v339_v26, %v328_v20 }
  0x32   : > { %1213 = vmatpush3.bf16.msra.mxu1 %v1323_v28  ;;  %1192 = vmatprep.subr.bf16.mxu0 %v1324_v29  ;;  %v333_v28 = vadd.f32 %v332_v23, %v322_v16  ;;  %v358_v29 = vadd.f32 %v357_v17, %v347_v24 }
  0x33   : > { %1214 = vmatprep.subr.bf16.mxu1 %v1325_v30  ;;  %v354_v30 = vmul.f32 %v328_v20, %v328_v20 }
  0x34   : > { %334 = vadd.xlane.f32.xlu0 %v333_v28  ;;  %v359_v34 = vadd.f32 %v358_v29, %v348_v25 }
  0x35   : > { %1193 = vmatpush3.bf16.msra.mxu0 %v1326_v31  ;;  %v1343_v31 = vld [vmem:[%s1738_s1 + $0x110] sm:$0xff]  }
  0x36   : > { %1215 = vmatpush3.bf16.msra.mxu1 %v1327_v32  ;;  %1222 = vmatprep.subr.bf16.mxu0 %v1332_v42  ;;  %v365_v32 = vadd.f32 %v364_v21, %v353_v27  ;;  %v1172_v21 = vld [vmem:[%s1740_s3] ss:$0 sm:$0xff] }
  0x37   : > { %360 = vadd.xlane.f32.xlu1 %v359_v34 }
  0x38   : > { %830 = vmatmul.mubr.bf16.vlgmr.msra.gmra.mxu0 %v1117_v41  ;;  %v366_v36 = vadd.f32 %v365_v32, %v354_v30  ;;  %341 = vadd.xlane.f32.xlu0 %v340_v35 }
  0x39   : > { %871 = vmatmul.mubr.bf16.vlgmr.msra.gmra.mxu1 %v1119_v45  ;;  %1223 = vmatpush3.bf16.msra.mxu0 %v1333_v46 }
  0x3a   : > { %1224 = vmatprep.subr.bf16.mxu0 %v1334_v47  ;;  %911 = vmatprep.mubr.bf16.mxu0 %v1122_v14 }
  0x3b   : > { %367 = vadd.xlane.f32.xlu1 %v366_v36 }
  0x3d   : > { %1225 = vmatpush3.bf16.msra.mxu0 %v1335_v54 }
  0x3e   : > { %1226 = vmatprep.subr.bf16.mxu0 %v1336_v55 }
  0x41   : > { %1227 = vmatpush3.bf16.msra.mxu0 %v1337_v61 }
  0x42   : > { %1228 = vmatprep.subr.bf16.mxu0 %v1338_v1 }
  0x45   : > { %1229 = vmatpush3.bf16.msra.mxu0 %v1339_v6 }
  0x46   : > { %1230 = vmatprep.subr.bf16.mxu0 %v1340_v9 }
  0x49   : > { %1231 = vmatpush3.bf16.msra.mxu0 %v1341_v18 }
  0x4a   : > { %1232 = vmatprep.subr.bf16.mxu0 %v1342_v22 }
  0x4d   : > { %1233 = vmatpush3.bf16.msra.mxu0 %v1343_v31 }
  0x4e   : > { %1234 = vmatprep.subr.bf16.mxu0 %v1344_v33 }
  0x51   : > { %1235 = vmatpush3.bf16.msra.mxu0 %v1345_v37 }
  0x52   : > { %1236 = vmatprep.subr.bf16.mxu0 %v1346_v38 }
  0x55   : > { %1237 = vmatpush3.bf16.msra.mxu0 %v1347_v39  ;;  %v1420_v39 = vmov 0.0  }
  0x56   : > { %1246 = vmatprep.subr.bf16.mxu1 %v1420_v39  ;;  %1248 = vmatprep.mubr.msk.bf16.mxu1 %vm1421_vm0, %v1420_v39 }
  0x58   : > { %912 = vmatmul.mubr.bf16.vlgmr.msra.gmra.mxu0 %v1121_v40  ;;  %v991_v40 = vld [vmem:[#allocation2] sm:$0x1] }
  0xbd   : > { %v335_v41 = vpop.xlane.xlu0 %334 }
  0xbe   : > { %v369_v42 = vmul.f32 0.0013020834, %v335_v41  ;;  %v1422_v41 = vmov 0  }
  0xbf   : > { %1295 = vset.pattern.permute.xlu0 %v1422_v41 }
  0xc0   : > { %v361_v43 = vpop.xlane.xlu1 %360  ;;  %v373_v45 = vmul.f32 %v369_v42, %v369_v42 }
  0xc1   : > { %v342_v44 = vpop.xlane.xlu0 %341  ;;  %v371_v46 = vmul.f32 0.0013020834, %v361_v43 }
  0xc2   : > { %v370_v47 = vmul.f32 0.0013020834, %v342_v44 }
  0xc3   : > { %v375_v49 = vsub.f32 %v371_v46, %v373_v45 }
  0xc4   : > { %v368_v48 = vpop.xlane.xlu1 %367  ;;  %v374_v50 = vmul.f32 %v370_v47, %v370_v47 }
  0xc5   : > { %v372_v51 = vmul.f32 0.0013020834, %v368_v48  ;;  %v377_v52 = vmax.f32 %v375_v49, 0.0 }
  0xc7   : > { %v376_v53 = vsub.f32 %v372_v51, %v374_v50  ;;  %v379_v54 = vadd.f32 1e-05, %v377_v52  ;;  %v1173_v52 = vld [vmem:[%s1741_s4] ss:$0 sm:$0xff] }
  0xc9   : > { %v378_v55 = vmax.f32 %v376_v53, 0.0  ;;  %1350 = vrsqrt.f32 %v379_v54 }
  0xcb   : > { %v380_v57 = vadd.f32 1e-05, %v378_v55 }
  0xcd   : > { %1352 = vrsqrt.f32 %v380_v57 }
  0xd6   : > { %v1351_v0 = vpop.eup %1350 }
  0xd7   : > { %v922_v6 = vmul.f32 %v1351_v0, %v369_v42 }
  0xd9   : > { %v931_v16 = vmul.f32 %v1171_v11, %v922_v6 }
  0xda   : > { %v1353_v12 = vpop.eup %1352 }
  0xdb   : > { %v923_v20 = vmul.f32 %v1353_v12, %v370_v47 }
  0xdd   : > { %v932_v26 = vmul.f32 %v1171_v11, %v923_v20 }
  0xf8   : > { %v1194_v56 = vpop.f32.mrf.mxu0 }
  0xf9   : > { %v1216_v58 = vpop.f32.mrf.mxu1 }
  0xfa   : > { %v1195_v59 = vpop.f32.mrf.mxu0 }
  0xfb   : > { %v1217_v60 = vpop.f32.mrf.mxu1  ;;  %v1196_v1 = vadd.f32 %v1195_v59, %v1194_v56  ;;  %v1174_v56 = vld [vmem:[%s1742_s5] ss:$0 sm:$0xff] }
  0xfc   : > { %v1197_v61 = vpop.f32.mrf.mxu0  ;;  %v1218_v2 = vadd.f32 %v1217_v60, %v1216_v58 }
  0xfd   : > { %v1219_v62 = vpop.f32.mrf.mxu1 }
  0xfe   : > { %v1198_v63 = vpop.f32.mrf.mxu0  ;;  %v873_v7 = vadd.f32 %v1218_v2, %v1196_v1 }
  0xff   : > { %v1220_v3 = vpop.f32.mrf.mxu1  ;;  %v1199_v8 = vadd.f32 %v1198_v63, %v1197_v61  ;;  %v989_v61 = vld [vmem:[%s1743_s6] sm:$0x1] }
 0x100   : > { %v1221_v9 = vadd.f32 %v1220_v3, %v1219_v62  ;;  %v997_v62 = vlaneseq }
 0x102   : > { %v876_v17 = vadd.f32 %v1221_v9, %v1199_v8  ;;  %v998_v63 = vshrl.u32 %v997_v62, 7 }
 0x118   : > { %v1238_v4 = vpop.f32.mrf.mxu0 }
 0x11a   : > { %v1239_v5 = vpop.f32.mrf.mxu0 }
 0x11b   : > { %v1240_v10 = vadd.f32 %v1239_v5, %v1238_v4 }
 0x11c   : > { %v1241_v13 = vpop.f32.mrf.mxu0 }
 0x11d   : > { %v914_v14 = vadd.f32 %v1240_v10, %v873_v7 }
 0x11e   : > { %v1242_v15 = vpop.f32.mrf.mxu0 }
 0x11f   : > { %v920_v18 = vmul.f32 %v1351_v0, %v914_v14  ;;  %v1243_v19 = vadd.f32 %v1242_v15, %v1241_v13  ;;  %v999_v0 = vsub.s32 0, %v998_v63 }
 0x121   : > { %v917_v22 = vadd.f32 %v1243_v19, %v876_v17  ;;  %v933_v23 = vsub.f32 %v920_v18, %v931_v16 }
 0x123   : > { %v921_v24 = vmul.f32 %v1353_v12, %v917_v22  ;;  %v942_v25 = vadd.f32 %v1172_v21, %v933_v23 }
 0x125   : > { %v944_v27 = vmax.f32 %v942_v25, 0.0  ;;  %v934_v28 = vsub.f32 %v921_v24, %v932_v26 }
 0x127   : > { %946 = vadd.xlane.f32.xlu0 %v944_v27  ;;  %v943_v29 = vadd.f32 %v1172_v21, %v934_v28 }
 0x129   : > { %v945_v30 = vmax.f32 %v943_v29, 0.0 }
 0x12b   : > { %948 = vadd.xlane.f32.xlu1 %v945_v30 }
 0x1b0   : > { %v947_v31 = vpop.xlane.xlu0 %946 }
 0x1b1   : > { %v951_v32 = vmul.f32 0.0078125, %v947_v31 }
 0x1b3   : > { %v953_v33 = vsub.f32 %v944_v27, %v951_v32 }
 0x1b4   : > { %v949_v34 = vpop.xlane.xlu1 %948 }
 0x1b5   : > { %v952_v35 = vmul.f32 0.0078125, %v949_v34  ;;  %v955_v36 = vmul.f32 %v953_v33, %v953_v33 }
 0x1b7   : > { %v954_v37 = vsub.f32 %v945_v30, %v952_v35  ;;  %957 = vadd.xlane.f32.xlu0 %v955_v36 }
 0x1b9   : > { %v956_v38 = vmul.f32 %v954_v37, %v954_v37 }
 0x1bb   : > { %959 = vadd.xlane.f32.xlu1 %v956_v38 }
 0x1cd   : > { %994 = vperm.xlu0 %1295, %v991_v40  }
 0x240   : > { %v958_v42 = vpop.xlane.xlu0 %957 }
 0x241   : > { %v961_v43 = vmul.f32 0.0078125, %v958_v42 }
 0x243   : > { %v963_v44 = vmax.f32 %v961_v43, 0.0 }
 0x244   : > { %v960_v45 = vpop.xlane.xlu1 %959 }
 0x245   : > { %v965_v46 = vadd.f32 1e-05, %v963_v44  ;;  %v962_v47 = vmul.f32 0.0078125, %v960_v45 }
 0x247   : > { %1354 = vrsqrt.f32 %v965_v46  ;;  %v964_v48 = vmax.f32 %v962_v47, 0.0 }
 0x248   : > { %v995_v1 = vpop.permute.xlu0 %994 }
 0x249   : > { %v966_v49 = vadd.f32 1e-05, %v964_v48  ;;  %v1000_v2 = vrot.slane %v995_v1, %v999_v0 }
 0x24b   : > { %1356 = vrsqrt.f32 %v966_v49 }
 0x254   : > { %v1355_v50 = vpop.eup %1354 }
 0x255   : > { %v969_v51 = vmul.f32 %v1355_v50, %v953_v33 }
 0x257   : > { %v978_v55 = vmul.f32 %v1173_v52, %v969_v51 }
 0x258   : > { %v1357_v53 = vpop.eup %1356 }
 0x259   : > { %v970_v54 = vmul.f32 %v1357_v53, %v954_v37  ;;  %v987_v58 = vadd.f32 %v1174_v56, %v978_v55 }
 0x25b   : > { %v979_v57 = vmul.f32 %v1173_v52, %v970_v54 }
 0x25d   : > { %v988_v59 = vadd.f32 %v1174_v56, %v979_v57 }
 0x25f   : > { %v990_v60 = vpack.c.bf16 %v988_v59, %v987_v58 }
 0x261   : > { %1247 = vmatpush3.bf16.xpose.msra.mxu1 %v990_v60 }
 0x268   : > { %1249 = vmatmul.mubr.bf16.vlgmr.msra.gmra.mxu1 %v989_v61 }
 0x328   : > { %v1035_v3 = vpop.f32.mrf.mxu1 }
 0x329   : > { %v1036_v4 = vadd.f32 %v1035_v3, %v1000_v2 }
 0x32a   : > { %v1250_v5 = vpop.f32.mrf.mxu1 }
 0x32b   : > { %1042 = vst.msk [vmem:[%s302_s22] sm:$0x1] %vm1041_vm1, %v1036_v4 }
 0x32c   : > { %v1038_v6 = vpop.f32.mrf.mxu1 }
 0x32d   : > { %1371 = shalt.err (!%p1368_p3)
}
 0x32e   : > { %s1372_s14 = scalar_lea.hbm %s1696_s20, 16  ;;  %s1376_s19 = scalar_lea.hbm %s1745_s8, 32 }
 0x32f   : > { %p1373_p4 = scmp.ne.s32.totalorder %s1696_s20, %s1372_s14  ;;  %p1377_p9 = scmp.lt.s32.totalorder %s1696_s20, %s1745_s8 }
 0x330   : > { %p1378_p10 = scmp.lt.s32.totalorder %s1376_s19, %s1372_s14 }
 0x331   : > { %p1374_p7 = pnand %p1373_p4, %p1510_p5 }
 0x332   : > { %p1379_p11 = por %p1378_p10, %p1377_p9 }
 0x333   : > { %p1375_p8 = pneg %p1374_p7 }
 0x335   : > { %p1380_p12 = pnand %p1379_p11, %p1375_p8 }
 0x337   : > { %1383 = shalt.err (!%p1380_p12)
}
 0x338   : > { %1253 = dma.vmem_to_hbm [thread:$0]  (%p1510_p5), %s1698_s23, 16, %s1696_s20, %s1044_s26   ;;  %v1251_v7 = vpop.f32.mrf.mxu1 }
 0x339 PF: > { %p1259_p13 = scmp.ge.s32.totalorder %s1418_s10, 2  ;;  %s1068_s24 = sand.u32 1, %s1406_s29  }
 0x33a   : > { %s1069_s25 = scalar_lea.sflag [#allocation4], %s1068_s24 }
 0x33b   : > { %p1256_p0 = pnand %p1259_p13, %p1514_p6 }
 0x33d   : > { %p1257_p1 = pneg %p1256_p0 }
 0x33f   : > { %1401 = dma.done.wait (%p1257_p1), %s1069_s25, 16  }
 0x340   : > { %1403 = vsyncadd (%p1257_p1), %s1069_s25, 4294967280  ;;  %p20_p2 = scmp.ge.s32.totalorder %s1497_s12, 4   ;;  %s1748_s29 = smov %s1410_s30 }
 0x341   : > { %s1749_s30 = smov %s1414_s9  ;;  %s1750_s9 = smov %s1508_s15 }
 0x342   : > { %s1751_s10 = smov %s1497_s12  ;;  %22 = sbr.rel (!%p20_p2) target bundleno = 6 (0x6), region = 87 }
 0x347   :  { %1073 = vsyncpa [#allocation4], 1 }
 0x348   :  { %1075 = vsyncpa [#allocation4 + $0x1], 1 }

// kernel: entity_detection_forward.3
= control target key start
LH: loop header
LB: loop body
LE: loop exit
PB: predicated region body
PF: predicated region fallthrough
CT: control target
= control target key end

     0   :  { %vm2476_vm0 = vmmov 0   ;;  %vm1968_vm1 = vcmask 516096   ;;  %s3359_s2 = inlined_call_operand.vmem [shape: bf16[768,128], index: 2, kind: input, shape index: {}]   ;;  %s3360_s1 = inlined_call_operand.vmem [shape: bf16[16,768], index: 1, kind: input, shape index: {}]   ;;  %s3361_s0 = inlined_call_operand.vmem [shape: bf16[64,768], index: 0, kind: input, shape index: {}]   ;;  %s3362_s3 = inlined_call_operand.vmem [shape: bf16[768,128], index: 3, kind: input, shape index: {}]   ;;  %s3363_s4 = inlined_call_operand.vmem [shape: f32[1,128], index: 4, kind: input, shape index: {}]   ;;  %s3364_s5 = inlined_call_operand.vmem [shape: f32[1,128], index: 5, kind: input, shape index: {}]   ;;  %s3365_s9 = inlined_call_operand.<no memory space> [shape: f32[1,1], index: 9, kind: input, shape index: {}]   ;;  %s3366_s6 = inlined_call_operand.vmem [shape: f32[1,128], index: 6, kind: input, shape index: {}]   ;;  %s3367_s7 = inlined_call_operand.vmem [shape: f32[1,128], index: 7, kind: input, shape index: {}]   ;;  %s3368_s8 = inlined_call_operand.vmem [shape: bf16[1,128], index: 8, kind: input, shape index: {}]   ;;  %s3369_s10 = inlined_call_operand.vmem [shape: f32[1,1,64], index: 10, kind: output, shape index: {}]  }
   0x1   :  { %v2312_v0 = vld [vmem:[%s3359_s2 + $0x78] sm:$0xff]   ;;  %v2316_v4 = vld [vmem:[%s3359_s2 + $0x70] sm:$0xff]   ;;  %v2320_v8 = vld [vmem:[%s3359_s2 + $0x68] sm:$0xff]  }
   0x2   :  { %v2313_v1 = vld [vmem:[%s3359_s2 + $0x38] sm:$0xff]   ;;  %2104 = vmatprep.subr.bf16.mxu0 %v2312_v0  ;;  %v2317_v5 = vld [vmem:[%s3359_s2 + $0x30] sm:$0xff]   ;;  %v2321_v9 = vld [vmem:[%s3359_s2 + $0x28] sm:$0xff]  }
   0x3   :  { %v2314_v2 = vld [vmem:[%s3359_s2 + $0xf8] sm:$0xff]   ;;  %2105 = vmatpush3.bf16.msra.mxu0 %v2313_v1  ;;  %v2318_v6 = vld [vmem:[%s3359_s2 + $0xf0] sm:$0xff]   ;;  %v2322_v10 = vld [vmem:[%s3359_s2 + $0xe8] sm:$0xff]  }
   0x4   :  { %v2315_v3 = vld [vmem:[%s3359_s2 + $0xb8] sm:$0xff]   ;;  %2144 = vmatprep.subr.bf16.mxu1 %v2314_v2  ;;  %2106 = vmatprep.subr.bf16.mxu0 %v2316_v4  ;;  %v2319_v7 = vld [vmem:[%s3359_s2 + $0xb0] sm:$0xff]   ;;  %v2568_v11 = vld [vmem:[%s3360_s1] sm:$0xff] }
   0x5   :  { %2145 = vmatpush3.bf16.msra.mxu1 %v2315_v3  ;;  %v63_v12 = vld [vmem:[%s3360_s1 + $0x8] sm:$0xff]  ;;  %v2576_v13 = vld [vmem:[%s3360_s1 + $0x10] sm:$0xff]  ;;  %v2579_v14 = vunpack.c.l.bf16 %v2568_v11  ;;  %v2582_v15 = vunpack.c.h.bf16 %v2568_v11  ;;  %v2594_v18 = vld [vmem:[%s3361_s0 + $0x98] sm:$0xff] }
   0x6   :  { %2146 = vmatprep.subr.bf16.mxu1 %v2318_v6  ;;  %v2584_v16 = vunpack.c.l.bf16 %v63_v12  ;;  %v2589_v17 = vld [vmem:[%s3361_s0 + $0x90] sm:$0xff]  ;;  %v2599_v19 = vld [vmem:[%s3361_s0 + $0xa0] sm:$0xff]  ;;  %v2323_v22 = vld [vmem:[%s3359_s2 + $0xa8] sm:$0xff]   ;;  %v2606_v23 = vunpack.c.h.bf16 %v63_v12  ;;  %v106_v25 = vunpack.c.l.bf16 %v2594_v18  ;;  %v107_v27 = vunpack.c.h.bf16 %v2594_v18 }
   0x7   :  { %2107 = vmatpush3.bf16.msra.mxu0 %v2317_v5  ;;  %v104_v20 = vunpack.c.l.bf16 %v2589_v17  ;;  %v105_v21 = vunpack.c.h.bf16 %v2589_v17  ;;  %v1524_v24 = vadd.f32 %v2582_v15, %v2579_v14  ;;  %v2324_v26 = vld [vmem:[%s3359_s2 + $0x60] sm:$0xff]   ;;  %v2619_v32 = vunpack.c.l.bf16 %v2576_v13  ;;  %v2633_v39 = vld [vmem:[%s3360_s1 + $0x18] sm:$0xff]  ;;  %v2641_v41 = vld [vmem:[%s3360_s1 + $0x28] sm:$0xff] }
   0x8   :  { %2108 = vmatprep.subr.bf16.mxu0 %v2320_v8  ;;  %v2325_v29 = vld [vmem:[%s3359_s2 + $0x20] sm:$0xff]   ;;  %v2622_v33 = vunpack.c.h.bf16 %v2576_v13  ;;  %v108_v35 = vunpack.c.l.bf16 %v2599_v19  ;;  %v109_v37 = vunpack.c.h.bf16 %v2599_v19  ;;  %v1458_v42 = vmul.f32 %v106_v25, %v106_v25  ;;  %v2649_v48 = vld [vmem:[%s3361_s0 + $0xa8] sm:$0xff]  ;;  %v2654_v49 = vld [vmem:[%s3361_s0 + $0xb0] sm:$0xff] }
   0x9   :  { %2147 = vmatpush3.bf16.msra.mxu1 %v2319_v7  ;;  %v1406_v28 = vadd.f32 %v105_v21, %v104_v20  ;;  %v1456_v30 = vmul.f32 %v104_v20, %v104_v20  ;;  %v1457_v31 = vmul.f32 %v105_v21, %v105_v21  ;;  %v1525_v34 = vadd.f32 %v1524_v24, %v2584_v16  ;;  %v2326_v36 = vld [vmem:[%s3359_s2 + $0xe0] sm:$0xff]   ;;  %v2659_v50 = vld [vmem:[%s3361_s0 + $0xb8] sm:$0xff] }
   0xa   :  { %2148 = vmatprep.subr.bf16.mxu1 %v2322_v10  ;;  %v66_v40 = vld [vmem:[%s3360_s1 + $0x20] sm:$0xff]  ;;  %v1459_v43 = vmul.f32 %v107_v27, %v107_v27  ;;  %v122_v45 = vunpack.c.l.bf16 %v2633_v39  ;;  %v123_v46 = vunpack.c.h.bf16 %v2633_v39  ;;  %v1460_v54 = vmul.f32 %v108_v35, %v108_v35  ;;  %v2328_v60 = vld [vmem:[%s3359_s2 + $0x58] sm:$0xff]  }
   0xb   :  { %2109 = vmatpush3.bf16.msra.mxu0 %v2321_v9  ;;  %v1407_v38 = vadd.f32 %v1406_v28, %v106_v25  ;;  %v1526_v44 = vadd.f32 %v1525_v34, %v2606_v23  ;;  %v124_v47 = vunpack.c.l.bf16 %v66_v40  ;;  %v125_v52 = vunpack.c.h.bf16 %v66_v40  ;;  %v2327_v53 = vld [vmem:[%s3359_s2 + $0xa0] sm:$0xff]   ;;  %v2329_v1 = vld [vmem:[%s3359_s2 + $0x18] sm:$0xff]   ;;  %v2332_v25 = vld [vmem:[%s3359_s2 + $0x50] sm:$0xff]  }
   0xc   :  { %2110 = vmatprep.subr.bf16.mxu0 %v2324_v26  ;;  %v1510_v55 = vadd.f32 %v1457_v31, %v1456_v30  ;;  %v1531_v57 = vadd.f32 %v123_v46, %v122_v45  ;;  %v110_v58 = vunpack.c.l.bf16 %v2649_v48  ;;  %v111_v59 = vunpack.c.h.bf16 %v2649_v48  ;;  %v2330_v6 = vld [vmem:[%s3359_s2 + $0xd8] sm:$0xff]   ;;  %v2333_v30 = vld [vmem:[%s3359_s2 + $0x10] sm:$0xff]  }
   0xd   :  { %2149 = vmatpush3.bf16.msra.mxu1 %v2323_v22  ;;  %v1408_v51 = vadd.f32 %v1407_v38, %v107_v27  ;;  %v1527_v56 = vadd.f32 %v1526_v44, %v2619_v32  ;;  %v126_v62 = vunpack.c.l.bf16 %v2641_v41  ;;  %v112_v63 = vunpack.c.l.bf16 %v2654_v49  ;;  %v2331_v12 = vld [vmem:[%s3359_s2 + $0x98] sm:$0xff]  }
   0xe   :  { %2150 = vmatprep.subr.bf16.mxu1 %v2326_v36  ;;  %v113_v0 = vunpack.c.h.bf16 %v2654_v49  ;;  %v1532_v3 = vadd.f32 %v1531_v57, %v124_v47  ;;  %v114_v4 = vunpack.c.l.bf16 %v2659_v50  ;;  %v1413_v5 = vadd.f32 %v111_v59, %v110_v58  ;;  %v2334_v36 = vld [vmem:[%s3359_s2 + $0xd0] sm:$0xff]  }
   0xf   :  { %2111 = vmatpush3.bf16.msra.mxu0 %v2325_v29  ;;  %v1409_v61 = vadd.f32 %v1408_v51, %v108_v35  ;;  %v1528_v2 = vadd.f32 %v1527_v56, %v2622_v33  ;;  %v1462_v8 = vmul.f32 %v110_v58, %v110_v58  ;;  %v1463_v9 = vmul.f32 %v111_v59, %v111_v59  ;;  %v2335_v51 = vld [vmem:[%s3359_s2 + $0x90] sm:$0xff]  }
  0x10   :  { %2112 = vmatprep.subr.bf16.mxu0 %v2328_v60  ;;  %v1464_v10 = vmul.f32 %v112_v63, %v112_v63  ;;  %v127_v20 = vunpack.c.h.bf16 %v2641_v41  ;;  %v1533_v21 = vadd.f32 %v1532_v3, %v125_v52  ;;  %v1414_v22 = vadd.f32 %v1413_v5, %v112_v63 }
  0x11   :  { %2151 = vmatpush3.bf16.msra.mxu1 %v2327_v53  ;;  %v1410_v7 = vadd.f32 %v1409_v61, %v109_v37  ;;  %1529 = vadd.xlane.f32.xlu1 %v1528_v2  ;;  %v1461_v24 = vmul.f32 %v109_v37, %v109_v37  ;;  %v1465_v26 = vmul.f32 %v113_v0, %v113_v0  ;;  %v115_v34 = vunpack.c.h.bf16 %v2659_v50 }
  0x12   :  { %2152 = vmatprep.subr.bf16.mxu1 %v2330_v6  ;;  %v1466_v27 = vmul.f32 %v114_v4, %v114_v4  ;;  %v1517_v28 = vadd.f32 %v1463_v9, %v1462_v8  ;;  %v1511_v29 = vadd.f32 %v1510_v55, %v1458_v42  ;;  %v1534_v31 = vadd.f32 %v1533_v21, %v126_v62  ;;  %v2735_v6 = vld [vmem:[%s3361_s0 + $0x60] sm:$0xff] }
  0x13   :  { %2113 = vmatpush3.bf16.msra.mxu0 %v2329_v1  ;;  %1411 = vadd.xlane.f32.xlu0 %v1410_v7  ;;  %v1415_v35 = vadd.f32 %v1414_v22, %v113_v0  ;;  %v1544_v37 = vmul.f32 %v122_v45, %v122_v45  ;;  %v1545_v44 = vmul.f32 %v123_v46, %v123_v46  ;;  %v2336_v45 = vld [vmem:[%s3359_s2 + $0x48] sm:$0xff]  }
  0x14   :  { %2114 = vmatprep.subr.bf16.mxu0 %v2332_v25  ;;  %v1518_v38 = vadd.f32 %v1517_v28, %v1464_v10  ;;  %v1512_v40 = vadd.f32 %v1511_v29, %v1459_v43  ;;  %v1546_v42 = vmul.f32 %v124_v47, %v124_v47  ;;  %v1535_v53 = vadd.f32 %v1534_v31, %v127_v20  ;;  %v2337_v47 = vld [vmem:[%s3359_s2 + $0x8] sm:$0xff]  }
  0x15   :  { %2153 = vmatpush3.bf16.msra.mxu1 %v2331_v12  ;;  %v1416_v55 = vadd.f32 %v1415_v35, %v114_v4  ;;  %v1467_v56 = vmul.f32 %v115_v34, %v115_v34  ;;  %v1538_v57 = vmul.f32 %v2579_v14, %v2579_v14  ;;  %v1547_v59 = vmul.f32 %v125_v52, %v125_v52  ;;  %v2338_v0 = vld [vmem:[%s3359_s2 + $0xc8] sm:$0xff]  }
  0x16   :  { %2154 = vmatprep.subr.bf16.mxu1 %v2334_v36  ;;  %v1519_v58 = vadd.f32 %v1518_v38, %v1465_v26  ;;  %v1513_v43 = vadd.f32 %v1512_v40, %v1460_v54  ;;  %v1557_v46 = vadd.f32 %v1545_v44, %v1544_v37  ;;  %1536 = vadd.xlane.f32.xlu1 %v1535_v53  ;;  %v2728_v4 = vld [vmem:[%s3361_s0 + $0x88] sm:$0xff]  ;;  %v2754_v26 = vld [vmem:[%s3361_s0 + $0x70] sm:$0xff]  ;;  %v92_v28 = vunpack.c.l.bf16 %v2735_v6  ;;  %v2342_v37 = vld [vmem:[%s3359_s2 + $0xc0] sm:$0xff]  }
  0x17   :  { %2115 = vmatpush3.bf16.msra.mxu0 %v2333_v30  ;;  %v1417_v60 = vadd.f32 %v1416_v55, %v115_v34  ;;  %v1548_v61 = vmul.f32 %v126_v62, %v126_v62  ;;  %v1539_v63 = vmul.f32 %v2582_v15, %v2582_v15  ;;  %v1540_v14 = vmul.f32 %v2584_v16, %v2584_v16  ;;  %v2718_v62 = vld [vmem:[%s3361_s0 + $0x78] sm:$0xff]  ;;  %v2723_v15 = vld [vmem:[%s3361_s0 + $0x80] sm:$0xff]  ;;  %v2740_v7 = vld [vmem:[%s3361_s0 + $0x68] sm:$0xff] }
  0x18   :  { %v1520_v54 = vadd.f32 %v1519_v58, %v1466_v27  ;;  %v1549_v52 = vmul.f32 %v127_v20, %v127_v20  ;;  %v1558_v1 = vadd.f32 %v1557_v46, %v1546_v42  ;;  %v1541_v2 = vmul.f32 %v2606_v23, %v2606_v23  ;;  %2116 = vmatprep.subr.bf16.mxu0 %v2336_v45  ;;  %v2339_v20 = vld [vmem:[%s3359_s2 + $0x88] sm:$0xff]   ;;  %v2341_v30 = vld [vmem:[%s3359_s2] sm:$0xff]  }
  0x19   :  { %2155 = vmatpush3.bf16.msra.mxu1 %v2335_v51  ;;  %1418 = vadd.xlane.f32.xlu0 %v1417_v60  ;;  %v1514_v16 = vadd.f32 %v1513_v43, %v1461_v24  ;;  %v1550_v3 = vadd.f32 %v1539_v63, %v1538_v57  ;;  %v98_v23 = vunpack.c.l.bf16 %v2718_v62  ;;  %v99_v5 = vunpack.c.h.bf16 %v2718_v62  ;;  %v2344_v57 = vld [vmem:[%s3359_s2 + $0x80] sm:$0xff]  }
  0x1a   :  { %v1521_v8 = vadd.f32 %v1520_v54, %v1467_v56  ;;  %v1559_v9 = vadd.f32 %v1558_v1, %v1547_v59  ;;  %v1542_v10 = vmul.f32 %v2619_v32, %v2619_v32  ;;  %2156 = vmatprep.subr.bf16.mxu1 %v2338_v0  ;;  %v100_v12 = vunpack.c.l.bf16 %v2723_v15  ;;  %v2340_v32 = vld [vmem:[%s3359_s2 + $0x40] sm:$0xff]   ;;  %v2346_v59 = vld [vmem:[%s3359_s2 + $0x178] sm:$0xff]  }
  0x1b   :  { %2117 = vmatpush3.bf16.msra.mxu0 %v2337_v47  ;;  %v1543_v21 = vmul.f32 %v2622_v33, %v2622_v33  ;;  %v1551_v22 = vadd.f32 %v1550_v3, %v1540_v14  ;;  %v101_v24 = vunpack.c.h.bf16 %v2723_v15  ;;  %v1399_v25 = vadd.f32 %v99_v5, %v98_v23  ;;  %v38_v63 = vld [vmem:[%s3361_s0] sm:$0xff]  ;;  %v41_v1 = vld [vmem:[%s3361_s0 + $0x18] sm:$0xff] }
  0x1c   :  { %1522 = vadd.xlane.f32.xlu1 %v1521_v8  ;;  %v1560_v27 = vadd.f32 %v1559_v9, %v1548_v61  ;;  %v93_v29 = vunpack.c.h.bf16 %v2735_v6  ;;  %v94_v33 = vunpack.c.l.bf16 %v2740_v7  ;;  %v102_v34 = vunpack.c.l.bf16 %v2728_v4  ;;  %2118 = vmatprep.subr.bf16.mxu0 %v2340_v32 }
  0x1d   :  { %2157 = vmatpush3.bf16.msra.mxu1 %v2339_v20  ;;  %1515 = vadd.xlane.f32.xlu0 %v1514_v16  ;;  %v1552_v31 = vadd.f32 %v1551_v22, %v1541_v2  ;;  %v103_v35 = vunpack.c.h.bf16 %v2728_v4  ;;  %v1400_v36 = vadd.f32 %v1399_v25, %v100_v12  ;;  %v95_v40 = vunpack.c.h.bf16 %v2740_v7  ;;  %v2348_v2 = vld [vmem:[%s3362_s3 + $0x78] sm:$0xff]   ;;  %v2799_v20 = vld [vmem:[%s3361_s0 + $0x50] sm:$0xff] }
  0x1e   :  { %v1561_v38 = vadd.f32 %v1560_v27, %v1549_v52  ;;  %v1392_v44 = vadd.f32 %v93_v29, %v92_v28  ;;  %v1450_v42 = vmul.f32 %v98_v23, %v98_v23  ;;  %2158 = vmatprep.subr.bf16.mxu1 %v2342_v37  ;;  %v1451_v55 = vmul.f32 %v99_v5, %v99_v5  ;;  %v2804_v25 = vld [vmem:[%s3361_s0 + $0x30] sm:$0xff] }
  0x1f   :  { %2119 = vmatpush3.bf16.msra.mxu0 %v2341_v30  ;;  %v1553_v51 = vadd.f32 %v1552_v31, %v1542_v10  ;;  %v1401_v53 = vadd.f32 %v1400_v36, %v101_v24  ;;  %v1452_v56 = vmul.f32 %v100_v12, %v100_v12  ;;  %v96_v45 = vunpack.c.l.bf16 %v2754_v26  ;;  %v2347_v10 = vld [vmem:[%s3359_s2 + $0x138] sm:$0xff]   ;;  %v2794_v12 = vld [vmem:[%s3361_s0 + $0x48] sm:$0xff]  ;;  %v2352_v37 = vld [vmem:[%s3359_s2 + $0x170] sm:$0xff]  }
  0x20   :  { %1562 = vadd.xlane.f32.xlu1 %v1561_v38  ;;  %v1393_v58 = vadd.f32 %v1392_v44, %v94_v33  ;;  %v1453_v43 = vmul.f32 %v101_v24, %v101_v24  ;;  %v1503_v60 = vadd.f32 %v1451_v55, %v1450_v42  ;;  %v1444_v61 = vmul.f32 %v92_v28, %v92_v28  ;;  %v2814_v30 = vld [vmem:[%s3361_s0 + $0x38] sm:$0xff] }
  0x21   :  { %v1554_v46 = vadd.f32 %v1553_v51, %v1543_v21  ;;  %v1402_v47 = vadd.f32 %v1401_v53, %v102_v34  ;;  %2159 = vmatpush3.bf16.msra.mxu1 %v2344_v57  ;;  %v97_v14 = vunpack.c.h.bf16 %v2754_v26  ;;  %v1445_v54 = vmul.f32 %v93_v29, %v93_v29  ;;  %2184 = vmatprep.subr.bf16.mxu0 %v2346_v59  ;;  %v2829_v51 = vld [vmem:[%s3361_s0 + $0x8] sm:$0xff] }
  0x22   :  { %v1394_v0 = vadd.f32 %v1393_v58, %v95_v40  ;;  %v1446_v52 = vmul.f32 %v94_v33, %v94_v33  ;;  %v1454_v3 = vmul.f32 %v102_v34, %v102_v34  ;;  %v1504_v23 = vadd.f32 %v1503_v60, %v1452_v56  ;;  %2224 = vmatprep.subr.bf16.mxu1 %v2348_v2  ;;  %v2809_v33 = vld [vmem:[%s3361_s0 + $0x58] sm:$0xff] }
  0x23   :  { %1555 = vadd.xlane.f32.xlu0 %v1554_v46  ;;  %v1403_v16 = vadd.f32 %v1402_v47, %v103_v35  ;;  %v1447_v8 = vmul.f32 %v95_v40, %v95_v40  ;;  %v1496_v9 = vadd.f32 %v1445_v54, %v1444_v61  ;;  %v1455_v21 = vmul.f32 %v103_v35, %v103_v35  ;;  %v2353_v47 = vld [vmem:[%s3359_s2 + $0x130] sm:$0xff]  }
  0x24   :  { %v1395_v5 = vadd.f32 %v1394_v0, %v96_v45  ;;  %v1505_v22 = vadd.f32 %v1504_v23, %v1453_v43  ;;  %v1975_v24 = vcombine.high %v38_v63, %v41_v1  ;;  %v1448_v27 = vmul.f32 %v96_v45, %v96_v45  ;;  %v2839_v45 = vld [vmem:[%s3361_s0 + $0x20] sm:$0xff] }
  0x25   :  { %1404 = vadd.xlane.f32.xlu1 %v1403_v16  ;;  %v1449_v28 = vmul.f32 %v97_v14, %v97_v14  ;;  %v1497_v29 = vadd.f32 %v1496_v9, %v1446_v52  ;;  %v2816_v34 = vunpack.c.l.bf16 %v38_v63  ;;  %v2818_v35 = vunpack.c.h.bf16 %v38_v63 }
  0x26   :  { %v1396_v32 = vadd.f32 %v1395_v5, %v97_v14  ;;  %v1506_v31 = vadd.f32 %v1505_v22, %v1454_v3  ;;  %664 = vmatprep.mubr.bf16.mxu0 %v1975_v24  ;;  %v1974_v36 = vcombine.low %v38_v63, %v41_v1  ;;  %v86_v40 = vunpack.c.l.bf16 %v2794_v12  ;;  %v2858_v14 = vld [vmem:[%s3361_s0 + $0x40] sm:$0xff]  ;;  %v2351_v5 = vld [vmem:[%s3362_s3 + $0x38] sm:$0xff]   ;;  %v2354_v24 = vld [vmem:[%s3362_s3 + $0x70] sm:$0xff]  }
  0x27   :  { %v1498_v38 = vadd.f32 %v1497_v29, %v1447_v8  ;;  %v87_v44 = vunpack.c.h.bf16 %v2794_v12  ;;  %v88_v42 = vunpack.c.l.bf16 %v2799_v20  ;;  %v2831_v55 = vunpack.c.l.bf16 %v41_v1 }
  0x28   :  { %1397 = vadd.xlane.f32.xlu0 %v1396_v32  ;;  %v1507_v53 = vadd.f32 %v1506_v31, %v1455_v21  ;;  %v2833_v56 = vunpack.c.h.bf16 %v41_v1  ;;  %665 = vmatmul.mubr.bf16.vlgmr.msra.gmra.mxu0 %v1974_v36  ;;  %v89_v57 = vunpack.c.h.bf16 %v2799_v20  ;;  %v80_v59 = vunpack.c.l.bf16 %v2804_v25  ;;  %v2358_v31 = vld [vmem:[%s3359_s2 + $0x168] sm:$0xff]  }
  0x29   :  { %v1499_v58 = vadd.f32 %v1498_v38, %v1448_v27  ;;  %2185 = vmatpush3.bf16.msra.mxu0 %v2347_v10  ;;  %v1385_v43 = vadd.f32 %v87_v44, %v86_v40  ;;  %v81_v46 = vunpack.c.h.bf16 %v2804_v25  ;;  %v2848_v60 = vmul.f32 %v2816_v34, %v2816_v34 }
  0x2a   :  { %1508 = vadd.xlane.f32.xlu1 %v1507_v53  ;;  %v2852_v61 = vmul.f32 %v2831_v55, %v2831_v55  ;;  %v90_v63 = vunpack.c.l.bf16 %v2809_v33  ;;  %v82_v0 = vunpack.c.l.bf16 %v2814_v30  ;;  %2186 = vmatprep.subr.bf16.mxu0 %v2352_v37  ;;  %v83_v1 = vunpack.c.h.bf16 %v2814_v30 }
  0x2b   :  { %v1500_v54 = vadd.f32 %v1499_v58, %v1449_v28  ;;  %v1386_v52 = vadd.f32 %v1385_v43, %v88_v42  ;;  %v1378_v2 = vadd.f32 %v81_v46, %v80_v59  ;;  %v91_v16 = vunpack.c.h.bf16 %v2809_v33 }
  0x2c   :  { %v1977_v3 = vcombine.high %v2829_v51, %v2839_v45  ;;  %v1976_v23 = vcombine.low %v2829_v51, %v2839_v45  ;;  %v1438_v8 = vmul.f32 %v86_v40, %v86_v40  ;;  %v84_v10 = vunpack.c.l.bf16 %v2858_v14 }
  0x2d   :  { %1501 = vadd.xlane.f32.xlu0 %v1500_v54  ;;  %v1387_v9 = vadd.f32 %v1386_v52, %v89_v57  ;;  %v1379_v21 = vadd.f32 %v1378_v2, %v82_v0  ;;  %2187 = vmatpush3.bf16.msra.mxu0 %v2353_v47  ;;  %v1439_v22 = vmul.f32 %v87_v44, %v87_v44  ;;  %v85_v27 = vunpack.c.h.bf16 %v2858_v14  ;;  %v2359_v44 = vld [vmem:[%s3359_s2 + $0x128] sm:$0xff]  }
  0x2e   :  { %v2876_v32 = vmul.f32 %v2833_v56, %v2833_v56  ;;  %729 = vmatprep.mubr.bf16.mxu1 %v1977_v3  ;;  %v1440_v28 = vmul.f32 %v88_v42, %v88_v42  ;;  %v1441_v29 = vmul.f32 %v89_v57, %v89_v57  ;;  %v1432_v40 = vmul.f32 %v80_v59, %v80_v59  ;;  %v2356_v57 = vld [vmem:[%s3362_s3 + $0x30] sm:$0xff]   ;;  %v2892_v59 = vld [vmem:[%s3361_s0 + $0x28] sm:$0xff] }
  0x2f   :  { %v1388_v36 = vadd.f32 %v1387_v9, %v90_v63  ;;  %v1380_v37 = vadd.f32 %v1379_v21, %v83_v1  ;;  %730 = vmatmul.mubr.bf16.vlgmr.msra.gmra.mxu1 %v1976_v23  ;;  %v1489_v38 = vadd.f32 %v1439_v22, %v1438_v8  ;;  %v76_v53 = vunpack.c.l.bf16 %v2839_v45  ;;  %2188 = vmatprep.subr.bf16.mxu0 %v2358_v31  ;;  %v2907_v9 = vld [vmem:[%s3361_s0 + $0x10] sm:$0xff] }
  0x30   :  { %2225 = vmatpush3.bf16.msra.mxu1 %v2351_v5  ;;  %v1442_v58 = vmul.f32 %v90_v63, %v90_v63  ;;  %v1433_v43 = vmul.f32 %v81_v46, %v81_v46  ;;  %v1434_v42 = vmul.f32 %v82_v0, %v82_v0  ;;  %v1443_v52 = vmul.f32 %v91_v16, %v91_v16  ;;  %v2361_v0 = vld [vmem:[%s3362_s3 + $0x68] sm:$0xff]  }
  0x31   :  { %v1389_v47 = vadd.f32 %v1388_v36, %v91_v16  ;;  %v1381_v54 = vadd.f32 %v1380_v37, %v84_v10  ;;  %v1490_v2 = vadd.f32 %v1489_v38, %v1440_v28  ;;  %2226 = vmatprep.subr.bf16.mxu1 %v2354_v24  ;;  %v1435_v3 = vmul.f32 %v83_v1, %v83_v1 }
  0x32   :  { %v1482_v23 = vadd.f32 %v1433_v43, %v1432_v40  ;;  %v1981_v46 = vcombine.high %v2804_v25, %v2794_v12  ;;  %v1980_v63 = vcombine.low %v2804_v25, %v2794_v12  ;;  %2189 = vmatpush3.bf16.msra.mxu0 %v2359_v44  ;;  %v77_v8 = vunpack.c.h.bf16 %v2839_v45  ;;  %v2365_v12 = vld [vmem:[%s3359_s2 + $0x160] sm:$0xff]  }
  0x33   :  { %1390 = vadd.xlane.f32.xlu1 %v1389_v47  ;;  %v1382_v16 = vadd.f32 %v1381_v54, %v85_v27  ;;  %v1491_v5 = vadd.f32 %v1490_v2, %v1441_v29  ;;  %v1371_v1 = vadd.f32 %v2833_v56, %v2831_v55  ;;  %v70_v25 = vunpack.c.l.bf16 %v2829_v51  ;;  %v2366_v55 = vld [vmem:[%s3359_s2 + $0x120] sm:$0xff]   ;;  %2190 = vmatprep.subr.bf16.mxu0 %v2365_v12 }
  0x34   :  { %v1436_v21 = vmul.f32 %v84_v10, %v84_v10  ;;  %v1483_v22 = vadd.f32 %v1482_v23, %v1434_v42  ;;  %672 = vmatprep.mubr.bf16.mxu0 %v1981_v46  ;;  %2227 = vmatpush3.bf16.msra.mxu1 %v2356_v57  ;;  %v1983_v45 = vcombine.high %v2814_v30, %v2799_v20  ;;  %v78_v28 = vunpack.c.l.bf16 %v2892_v59  ;;  %v2364_v10 = vld [vmem:[%s3362_s3 + $0x28] sm:$0xff]   ;;  %v2372_v46 = vld [vmem:[%s3359_s2 + $0x118] sm:$0xff]  }
  0x35   :  { %1383 = vadd.xlane.f32.xlu0 %v1382_v16  ;;  %v1492_v56 = vadd.f32 %v1491_v5, %v1442_v58  ;;  %v1437_v24 = vmul.f32 %v85_v27, %v85_v27  ;;  %673 = vmatmul.mubr.bf16.gmra.mxu0 %v1980_v63  ;;  %v1372_v29 = vadd.f32 %v1371_v1, %v76_v53  ;;  %v71_v36 = vunpack.c.h.bf16 %v2829_v51  ;;  %v2367_v27 = vld [vmem:[%s3362_s3 + $0x60] sm:$0xff]   ;;  %v2371_v51 = vld [vmem:[%s3359_s2 + $0x158] sm:$0xff]  }
  0x36   :  { %v1484_v31 = vadd.f32 %v1483_v22, %v1435_v3  ;;  %737 = vmatprep.mubr.bf16.mxu1 %v1983_v45  ;;  %2228 = vmatprep.subr.bf16.mxu1 %v2361_v0  ;;  %v1364_v37 = vadd.f32 %v2818_v35, %v2816_v34  ;;  %v1982_v38 = vcombine.low %v2814_v30, %v2799_v20  ;;  %v79_v44 = vunpack.c.h.bf16 %v2892_v59 }
  0x37   :  { %v1493_v40 = vadd.f32 %v1492_v56, %v1443_v52  ;;  %v1373_v58 = vadd.f32 %v1372_v29, %v77_v8  ;;  %v1428_v43 = vmul.f32 %v76_v53, %v76_v53  ;;  %v1421_v34 = vmul.f32 %v2818_v35, %v2818_v35  ;;  %2191 = vmatpush3.bf16.msra.mxu0 %v2366_v55  ;;  %v2369_v52 = vld [vmem:[%s3362_s3 + $0x20] sm:$0xff]  }
  0x38   :  { %v1485_v42 = vadd.f32 %v1484_v31, %v1436_v21  ;;  %v72_v20 = vunpack.c.l.bf16 %v2907_v9  ;;  %v1365_v30 = vadd.f32 %v1364_v37, %v70_v25  ;;  %738 = vmatmul.mubr.bf16.gmra.mxu1 %v1982_v38  ;;  %v73_v47 = vunpack.c.h.bf16 %v2907_v9  ;;  %2192 = vmatprep.subr.bf16.mxu0 %v2371_v51 }
  0x39   :  { %1494 = vadd.xlane.f32.xlu1 %v1493_v40  ;;  %v1374_v57 = vadd.f32 %v1373_v58, %v78_v28  ;;  %2229 = vmatpush3.bf16.msra.mxu1 %v2364_v10  ;;  %v1429_v54 = vmul.f32 %v77_v8, %v77_v8  ;;  %v1475_v53 = vadd.f32 %v2876_v32, %v2852_v61  ;;  %v2374_v61 = vld [vmem:[%s3362_s3 + $0x58] sm:$0xff]   ;;  %v2383_v10 = vld [vmem:[%s3359_s2 + $0x148] sm:$0xff]  }
  0x3a   :  { %v1486_v35 = vadd.f32 %v1485_v42, %v1437_v24  ;;  %v1366_v2 = vadd.f32 %v1365_v30, %v71_v36  ;;  %v1430_v3 = vmul.f32 %v78_v28, %v78_v28  ;;  %2230 = vmatprep.subr.bf16.mxu1 %v2367_v27  ;;  %v1422_v23 = vmul.f32 %v70_v25, %v70_v25  ;;  %v2376_v25 = vld [vmem:[%s3362_s3 + $0x18] sm:$0xff]   ;;  %v2381_v27 = vld [vmem:[%s3362_s3 + $0x10] sm:$0xff]  }
  0x3b   :  { %v1375_v63 = vadd.f32 %v1374_v57, %v79_v44  ;;  %v1431_v0 = vmul.f32 %v79_v44, %v79_v44  ;;  %v1476_v16 = vadd.f32 %v1475_v53, %v1428_v43  ;;  %v1423_v5 = vmul.f32 %v71_v36, %v71_v36  ;;  %2193 = vmatpush3.bf16.msra.mxu0 %v2372_v46  ;;  %v2386_v44 = vld [vmem:[%s3362_s3 + $0x48] sm:$0xff]   ;;  %v2391_v57 = vld [vmem:[%s3362_s3 + $0x40] sm:$0xff]  }
  0x3c   :  { %1487 = vadd.xlane.f32.xlu0 %v1486_v35  ;;  %v1367_v32 = vadd.f32 %v1366_v2, %v72_v20  ;;  %v1468_v8 = vadd.f32 %v1421_v34, %v2848_v60  ;;  %v1987_v1 = vcombine.high %v2735_v6, %v2718_v62  ;;  %v1986_v12 = vcombine.low %v2735_v6, %v2718_v62  ;;  %v2377_v60 = vld [vmem:[%s3359_s2 + $0x150] sm:$0xff]   ;;  %v2384_v43 = vld [vmem:[%s3359_s2 + $0x108] sm:$0xff]   ;;  %v2389_v34 = vld [vmem:[%s3359_s2 + $0x140] sm:$0xff]  }
  0x3d   :  { %1376 = vadd.xlane.f32.xlu1 %v1375_v63  ;;  %v1477_v21 = vadd.f32 %v1476_v16, %v1429_v54  ;;  %2231 = vmatpush3.bf16.msra.mxu1 %v2369_v52  ;;  %v1989_v22 = vcombine.high %v2740_v7, %v2723_v15  ;;  %v1988_v45 = vcombine.low %v2740_v7, %v2723_v15  ;;  %v2378_v6 = vld [vmem:[%s3359_s2 + $0x110] sm:$0xff]   ;;  %v2394_v54 = vld [vmem:[%s3362_s3 + $0xf8] sm:$0xff]   ;;  %v2406_v46 = vld [vmem:[%s3362_s3 + $0xe8] sm:$0xff]  }
  0x3e   :  { %v1368_v55 = vadd.f32 %v1367_v32, %v73_v47  ;;  %v1424_v56 = vmul.f32 %v72_v20, %v72_v20  ;;  %v1469_v62 = vadd.f32 %v1468_v8, %v1422_v23  ;;  %680 = vmatprep.mubr.bf16.mxu0 %v1987_v1  ;;  %v2379_v15 = vld [vmem:[%s3362_s3 + $0x50] sm:$0xff]   ;;  %v1425_v7 = vmul.f32 %v73_v47, %v73_v47  ;;  %v2390_v47 = vld [vmem:[%s3359_s2 + $0x100] sm:$0xff]   ;;  %v2397_v52 = vld [vmem:[%s3362_s3 + $0x178] sm:$0xff]  }
  0x3f   :  { %v1478_v24 = vadd.f32 %v1477_v21, %v1430_v3  ;;  %681 = vmatmul.mubr.bf16.gmra.mxu0 %v1986_v12  ;;  %745 = vmatprep.mubr.bf16.mxu1 %v1989_v22  ;;  %v1993_v29 = vcombine.high %v2589_v17, %v2649_v48  ;;  %v1995_v36 = vcombine.high %v2594_v18, %v2654_v49  ;;  %v3006_v20 = vld [vmem:[%s3360_s1 + $0x10] sm:$0xff]  ;;  %v2395_v35 = vld [vmem:[%s3362_s3 + $0xb8] sm:$0xff]   ;;  %v2408_v16 = vld [vmem:[%s3362_s3 + $0x168] sm:$0xff]  }
  0x40   :  { %1369 = vadd.xlane.f32.xlu0 %v1368_v55  ;;  %v1470_v28 = vadd.f32 %v1469_v62, %v1423_v5  ;;  %2232 = vmatprep.subr.bf16.mxu1 %v2374_v61  ;;  %v2046_v37 = vcombine.low %v2568_v11, %v2633_v39  ;;  %v1992_v40 = vcombine.low %v2589_v17, %v2649_v48  ;;  %v2400_v3 = vld [vmem:[%s3362_s3 + $0xf0] sm:$0xff]   ;;  %v2474_v5 = vmov 0   ;;  %v2407_v61 = vld [vmem:[%s3362_s3 + $0xa8] sm:$0xff]   ;;  %v2412_v8 = vld [vmem:[%s3362_s3 + $0x160] sm:$0xff]  }
  0x41   :  { %v1479_v31 = vadd.f32 %v1478_v24, %v1431_v0  ;;  %746 = vmatmul.mubr.bf16.gmra.mxu1 %v1988_v45  ;;  %2194 = vmatprep.subr.bf16.mxu0 %v2377_v60  ;;  %v1997_v58 = vcombine.high %v2599_v19, %v2659_v50  ;;  %v1979_v51 = vcombine.high %v2907_v9, %v2892_v59  ;;  %v2401_v23 = vld [vmem:[%s3362_s3 + $0xb0] sm:$0xff]   ;;  %v2411_v1 = vld [vmem:[%s3362_s3 + $0xa0] sm:$0xff]   ;;  %v2416_v12 = vld [vmem:[%s3362_s3 + $0xd8] sm:$0xff]  }
  0x42   :  { %v1471_v38 = vadd.f32 %v1470_v28, %v1424_v56  ;;  %2233 = vmatpush3.bf16.msra.mxu1 %v2376_v25  ;;  %2195 = vmatpush3.bf16.msra.mxu0 %v2378_v6  ;;  %v1996_v17 = vcombine.low %v2599_v19, %v2659_v50  ;;  %v1994_v48 = vcombine.low %v2594_v18, %v2654_v49  ;;  %v2388_v18 = vld [vmem:[%s3362_s3 + $0x8] sm:$0xff]   ;;  %v2471_v49 = vld [vmem:[%s3360_s1] sm:$0xff]  ;;  %v2404_v63 = vld [vmem:[%s3362_s3 + $0x130] sm:$0xff]  }
  0x43   :  { %1480 = vadd.xlane.f32.xlu1 %v1479_v31  ;;  %2234 = vmatprep.subr.bf16.mxu1 %v2379_v15  ;;  %v2051_v42 = vcombine.high %v2576_v13, %v2641_v41  ;;  %v2050_v30 = vcombine.low %v3006_v20, %v2641_v41  ;;  %v2047_v13 = vcombine.high %v2471_v49, %v2633_v39  ;;  %v2393_v39 = vld [vmem:[%s3362_s3] sm:$0xff]   ;;  %v2418_v22 = vld [vmem:[%s3362_s3 + $0x158] sm:$0xff]   ;;  %v2420_v60 = vld [vmem:[%s3362_s3 + $0xd0] sm:$0xff]  }
  0x44   :  { %v1472_v11 = vadd.f32 %v1471_v38, %v1425_v7  ;;  %688 = vmatprep.mubr.bf16.mxu0 %v1993_v29  ;;  %2196 = vmatprep.subr.bf16.mxu0 %v2383_v10  ;;  %v1978_v53 = vcombine.low %v2907_v9, %v2892_v59  ;;  %v1985_v2 = vcombine.high %v2858_v14, %v2809_v33  ;;  %v2399_v59 = vld [vmem:[%s3362_s3 + $0x138] sm:$0xff]   ;;  %v2402_v9 = vld [vmem:[%s3362_s3 + $0x170] sm:$0xff]   ;;  %v2414_v25 = vld [vmem:[%s3362_s3 + $0x120] sm:$0xff]  }
  0x45   :  { %753 = vmatprep.mubr.bf16.mxu1 %v1995_v36  ;;  %v1984_v0 = vcombine.low %v2858_v14, %v2809_v33  ;;  %2311 = vset.pattern.permute.xlu1 %v2474_v5  ;;  %v1991_v32 = vcombine.high %v2754_v26, %v2728_v4  ;;  %v2410_v33 = vld [vmem:[%s3362_s3 + $0xe0] sm:$0xff]   ;;  %v2409_v14 = vld [vmem:[%s3362_s3 + $0x128] sm:$0xff]   ;;  %v1990_v21 = vcombine.low %v2754_v26, %v2728_v4  ;;  %v2417_v45 = vld [vmem:[%s3362_s3 + $0x98] sm:$0xff]  }
  0x46   :  { %1473 = vadd.xlane.f32.xlu0 %v1472_v11  ;;  %2235 = vmatpush3.bf16.msra.mxu1 %v2381_v27  ;;  %v2419_v55 = vld [vmem:[%s3362_s3 + $0x118] sm:$0xff]   ;;  %v2422_v4 = vld [vmem:[%s3362_s3 + $0x150] sm:$0xff]   ;;  %v2426_v56 = vld [vmem:[%s3362_s3 + $0xc8] sm:$0xff]  }
  0x47   :  { %689 = vmatmul.mubr.bf16.gmra.mxu0 %v1992_v40  ;;  %2236 = vmatprep.subr.bf16.mxu1 %v2386_v44  ;;  %v2421_v26 = vld [vmem:[%s3362_s3 + $0x90] sm:$0xff]   ;;  %v2428_v6 = vld [vmem:[%s3362_s3 + $0x148] sm:$0xff]   ;;  %v2473_v7 = vld [vmem:[%s3360_s1 + $0x20] sm:$0xff] }
  0x48   :  { %2197 = vmatpush3.bf16.msra.mxu0 %v2384_v43  ;;  %794 = vmatprep.mubr.bf16.mxu0 %v1979_v51  ;;  %v2424_v62 = vld [vmem:[%s3362_s3 + $0x110] sm:$0xff]   ;;  %v2427_v24 = vld [vmem:[%s3362_s3 + $0x88] sm:$0xff]   ;;  %v2430_v29 = vld [vmem:[%s3362_s3 + $0xc0] sm:$0xff]  }
  0x49   :  { %754 = vmatmul.mubr.bf16.gmra.mxu1 %v1994_v48  ;;  %2198 = vmatprep.subr.bf16.mxu0 %v2389_v34  ;;  %v2472_v15 = vld [vmem:[%s3360_s1 + $0x8] sm:$0xff]  ;;  %v2432_v31 = vld [vmem:[%s3362_s3 + $0x140] sm:$0xff]  }
  0x4a   :  { %2237 = vmatpush3.bf16.msra.mxu1 %v2388_v18  ;;  %1273 = vmatprep.mubr.bf16.mxu1 %v2047_v13  ;;  %v2049_v28 = vcombine.high %v2472_v15, %v2473_v7  ;;  %v2429_v10 = vld [vmem:[%s3362_s3 + $0x108] sm:$0xff]   ;;  %v2431_v36 = vld [vmem:[%s3362_s3 + $0x80] sm:$0xff]   ;;  %v2048_v19 = vcombine.low %v2472_v15, %v2473_v7 }
  0x4b   :  { %2238 = vmatprep.subr.bf16.mxu1 %v2391_v57  ;;  %2310 = vset.pattern.permute.xlu0 %v2474_v5 }
  0x4c   :  { %2199 = vmatpush3.bf16.msra.mxu0 %v2390_v47 }
  0x4d   :  { %2246 = vmatprep.subr.bf16.mxu0 %v2394_v54 }
  0x4e   :  { %2239 = vmatpush3.bf16.msra.mxu1 %v2393_v39 }
  0x4f   :  { %795 = vmatmul.mubr.bf16.vlgmr.msra.gmra.mxu0 %v1978_v53  ;;  %2268 = vmatprep.subr.bf16.mxu1 %v2397_v52 }
  0x50   :  { %2247 = vmatpush3.bf16.msra.mxu0 %v2395_v35  ;;  %802 = vmatprep.mubr.bf16.mxu0 %v1985_v2 }
  0x51   :  { %1274 = vmatmul.mubr.bf16.vlgmr.msra.gmra.mxu1 %v2046_v37  ;;  %2248 = vmatprep.subr.bf16.mxu0 %v2400_v3  ;;  %v2434_v37 = vld [vmem:[%s3362_s3 + $0x100] sm:$0xff]  }
  0x52   :  { %2269 = vmatpush3.bf16.msra.mxu1 %v2399_v59  ;;  %1355 = vmatprep.mubr.bf16.mxu1 %v2051_v42 }
  0x53   :  { %2270 = vmatprep.subr.bf16.mxu1 %v2402_v9 }
  0x54   :  { %2249 = vmatpush3.bf16.msra.mxu0 %v2401_v23 }
  0x55   :  { %2250 = vmatprep.subr.bf16.mxu0 %v2406_v46 }
  0x56   :  { %2271 = vmatpush3.bf16.msra.mxu1 %v2404_v63 }
  0x57   :  { %803 = vmatmul.mubr.bf16.gmra.mxu0 %v1984_v0  ;;  %2272 = vmatprep.subr.bf16.mxu1 %v2408_v16 }
  0x58   :  { %2251 = vmatpush3.bf16.msra.mxu0 %v2407_v61  ;;  %810 = vmatprep.mubr.bf16.mxu0 %v1991_v32 }
  0x59   :  { %2252 = vmatprep.subr.bf16.mxu0 %v2410_v33 }
  0x5a   :  { %2273 = vmatpush3.bf16.msra.mxu1 %v2409_v14 }
  0x5b   :  { %2274 = vmatprep.subr.bf16.mxu1 %v2412_v8 }
  0x5c   :  { %2253 = vmatpush3.bf16.msra.mxu0 %v2411_v1 }
  0x5d   :  { %2254 = vmatprep.subr.bf16.mxu0 %v2416_v12 }
  0x5e   :  { %2275 = vmatpush3.bf16.msra.mxu1 %v2414_v25 }
  0x5f   :  { %811 = vmatmul.mubr.bf16.gmra.mxu0 %v1990_v21  ;;  %2276 = vmatprep.subr.bf16.mxu1 %v2418_v22 }
  0x60   :  { %2255 = vmatpush3.bf16.msra.mxu0 %v2417_v45  ;;  %818 = vmatprep.mubr.bf16.mxu0 %v1997_v58 }
  0x61   :  { %2256 = vmatprep.subr.bf16.mxu0 %v2420_v60 }
  0x62   :  { %2277 = vmatpush3.bf16.msra.mxu1 %v2419_v55 }
  0x63   :  { %2278 = vmatprep.subr.bf16.mxu1 %v2422_v4 }
  0x64   :  { %2257 = vmatpush3.bf16.msra.mxu0 %v2421_v26 }
  0x65   :  { %2258 = vmatprep.subr.bf16.mxu0 %v2426_v56 }
  0x66   :  { %2279 = vmatpush3.bf16.msra.mxu1 %v2424_v62 }
  0x67   :  { %819 = vmatmul.mubr.bf16.gmra.mxu0 %v1996_v17  ;;  %2280 = vmatprep.subr.bf16.mxu1 %v2428_v6 }
  0x68   :  { %2259 = vmatpush3.bf16.msra.mxu0 %v2427_v24  ;;  %1314 = vmatprep.mubr.bf16.mxu0 %v2049_v28 }
  0x69   :  { %2260 = vmatprep.subr.bf16.mxu0 %v2430_v29 }
  0x6a   :  { %2281 = vmatpush3.bf16.msra.mxu1 %v2429_v10 }
  0x6b   :  { %2282 = vmatprep.subr.bf16.mxu1 %v2432_v31 }
  0x6c   :  { %2261 = vmatpush3.bf16.msra.mxu0 %v2431_v36 }
  0x6e   :  { %2283 = vmatpush3.bf16.msra.mxu1 %v2434_v37 }
  0x6f   :  { %1315 = vmatmul.mubr.bf16.vlgmr.msra.gmra.mxu0 %v2048_v19 }
  0x71   :  { %1356 = vmatmul.mubr.bf16.vlgmr.msra.gmra.mxu1 %v2050_v30 }
  0x9a   :  { %v3147_v50 = vpop.xlane.xlu1 %1529 }
  0x9c   :  { %v1412_v38 = vpop.xlane.xlu0 %1411 }
  0x9d   :  { %v1570_v43 = vadd.f32 %v3147_v50, %v1412_v38 }
  0x9f   :  { %v3149_v27 = vpop.xlane.xlu1 %1536  ;;  %v3158_v41 = vmul.f32 0.0006510417, %v1570_v43 }
  0xa1   :  { %v1602_v13 = vmul.f32 %v3158_v41, %v3158_v41 }
  0xa2   :  { %v1419_v40 = vpop.xlane.xlu0 %1418 }
  0xa3   :  { %v1571_v44 = vadd.f32 %v3149_v27, %v1419_v40 }
  0xa5   :  { %v1523_v58 = vpop.xlane.xlu1 %1522  ;;  %v3153_v51 = vmul.f32 0.0006510417, %v1571_v44 }
  0xa6   :  { %v1516_v11 = vpop.xlane.xlu0 %1515 }
  0xa7   :  { %v1603_v34 = vmul.f32 %v3153_v51, %v3153_v51 }
  0xa9   :  { %v3155_v17 = vpop.xlane.xlu1 %1562 }
  0xaa   :  { %v1587_v48 = vadd.f32 %v3155_v17, %v1523_v58 }
  0xac   :  { %v1595_v42 = vmul.f32 0.0006510417, %v1587_v48  ;;  %v3162_v20 = vpop.xlane.xlu0 %1555 }
  0xad   :  { %v1586_v30 = vadd.f32 %v3162_v20, %v1516_v11 }
  0xae   :  { %v1611_v18 = vsub.f32 %v1595_v42, %v1603_v34  ;;  %v1405_v49 = vpop.xlane.xlu1 %1404 }
  0xaf   :  { %v1594_v57 = vmul.f32 0.0006510417, %v1586_v30  ;;  %v1569_v54 = vadd.f32 %v3149_v27, %v1405_v49 }
  0xb0   :  { %v1619_v47 = vmax.f32 %v1611_v18, 0.0 }
  0xb1   :  { %v1610_v39 = vsub.f32 %v1594_v57, %v1602_v13  ;;  %v1398_v53 = vpop.xlane.xlu0 %1397  ;;  %v3169_v3 = vmul.f32 0.0006510417, %v1569_v54 }
  0xb2   :  { %v1627_v52 = vadd.f32 1e-05, %v1619_v47  ;;  %v1568_v35 = vadd.f32 %v3147_v50, %v1398_v53 }
  0xb3   :  { %v1618_v2 = vmax.f32 %v1610_v39, 0.0  ;;  %v1509_v59 = vpop.xlane.xlu1 %1508  ;;  %v1601_v16 = vmul.f32 %v3169_v3, %v3169_v3 }
  0xb4   :  { %2438 = vrsqrt.f32 %v1627_v52  ;;  %v1585_v23 = vadd.f32 %v3155_v17, %v1509_v59  ;;  %v3172_v46 = vmul.f32 0.0006510417, %v1568_v35 }
  0xb5   :  { %v1626_v9 = vadd.f32 1e-05, %v1618_v2 }
  0xb6   :  { %v1593_v63 = vmul.f32 0.0006510417, %v1585_v23  ;;  %v1502_v0 = vpop.xlane.xlu0 %1501  ;;  %v1600_v61 = vmul.f32 %v3172_v46, %v3172_v46 }
  0xb7   :  { %2440 = vrsqrt.f32 %v1626_v9  ;;  %v1584_v5 = vadd.f32 %v3162_v20, %v1502_v0 }
  0xb8   :  { %v1609_v32 = vsub.f32 %v1593_v63, %v1601_v16 }
  0xb9   :  { %v1592_v33 = vmul.f32 0.0006510417, %v1584_v5 }
  0xba   :  { %v1617_v1 = vmax.f32 %v1609_v32, 0.0 }
  0xbb   :  { %v1608_v14 = vsub.f32 %v1592_v33, %v1600_v61 }
  0xbc   :  { %v1391_v8 = vpop.xlane.xlu1 %1390  ;;  %v1625_v60 = vadd.f32 1e-05, %v1617_v1 }
  0xbd   :  { %v1616_v12 = vmax.f32 %v1608_v14, 0.0  ;;  %v1567_v25 = vadd.f32 %v3149_v27, %v1391_v8 }
  0xbe   :  { %v1384_v22 = vpop.xlane.xlu0 %1383 }
  0xbf   :  { %v1624_v21 = vadd.f32 1e-05, %v1616_v12  ;;  %v1575_v55 = vmul.f32 0.0006510417, %v1567_v25  ;;  %v1566_v56 = vadd.f32 %v3147_v50, %v1384_v22 }
  0xc1   :  { %v2439_v45 = vpop.eup %2438  ;;  %2442 = vrsqrt.f32 %v1624_v21  ;;  %v1599_v6 = vmul.f32 %v1575_v55, %v1575_v55  ;;  %v1574_v29 = vmul.f32 0.0006510417, %v1566_v56 }
  0xc2   :  { %1681 = vperm.xlu1 %2311, %v2439_v45   ;;  %v1495_v4 = vpop.xlane.xlu1 %1494  ;;  %2444 = vrsqrt.f32 %v1625_v60  ;;  %v1699_v59 = vmul.f32 %v2439_v45, %v3153_v51 }
  0xc3   :  { %v1583_v62 = vadd.f32 %v3155_v17, %v1495_v4  ;;  %v1598_v38 = vmul.f32 %v1574_v29, %v1574_v29 }
  0xc4   :  { %v2441_v26 = vpop.eup %2440 }
  0xc5   :  { %1676 = vperm.xlu0 %2310, %v2441_v26   ;;  %v1591_v24 = vmul.f32 0.0006510417, %v1583_v62  ;;  %v1488_v15 = vpop.xlane.xlu0 %1487 }
  0xc6   :  { %v1582_v7 = vadd.f32 %v3162_v20, %v1488_v15  ;;  %v1377_v28 = vpop.xlane.xlu1 %1376 }
  0xc7   :  { %v1607_v10 = vsub.f32 %v1591_v24, %v1599_v6  ;;  %v1565_v31 = vadd.f32 %v3149_v27, %v1377_v28 }
  0xc8   :  { %v1590_v37 = vmul.f32 0.0006510417, %v1582_v7 }
  0xc9   :  { %v1615_v36 = vmax.f32 %v1607_v10, 0.0  ;;  %v1370_v19 = vpop.xlane.xlu0 %1369  ;;  %v1573_v44 = vmul.f32 0.0006510417, %v1565_v31 }
  0xca   :  { %v1564_v58 = vadd.f32 %v3147_v50, %v1370_v19  ;;  %v1606_v43 = vsub.f32 %v1590_v37, %v1598_v38 }
  0xcb   :  { %v1623_v40 = vadd.f32 1e-05, %v1615_v36  ;;  %v1597_v42 = vmul.f32 %v1573_v44, %v1573_v44 }
  0xcc   :  { %v1481_v11 = vpop.xlane.xlu1 %1480  ;;  %v1572_v30 = vmul.f32 0.0006510417, %v1564_v58  ;;  %v1614_v13 = vmax.f32 %v1606_v43, 0.0 }
  0xcd   :  { %2446 = vrsqrt.f32 %v1623_v40  ;;  %v1581_v48 = vadd.f32 %v3155_v17, %v1481_v11  ;;  %v1698_v17 = vmul.f32 %v2441_v26, %v3158_v41 }
  0xce   :  { %v2443_v34 = vpop.eup %2442  ;;  %v1596_v39 = vmul.f32 %v1572_v30, %v1572_v30  ;;  %v1622_v50 = vadd.f32 1e-05, %v1614_v13 }
  0xcf   :  { %v1589_v18 = vmul.f32 0.0006510417, %v1581_v48  ;;  %v1474_v49 = vpop.xlane.xlu0 %1473  ;;  %1666 = vperm.xlu1 %2311, %v2443_v34   ;;  %v2445_v47 = vpop.eup %2444  ;;  %v1696_v63 = vmul.f32 %v2443_v34, %v3172_v46 }
  0xd0   :  { %v1580_v27 = vadd.f32 %v3162_v20, %v1474_v49  ;;  %v1697_v0 = vmul.f32 %v2445_v47, %v3169_v3 }
  0xd1   :  { %v1605_v57 = vsub.f32 %v1589_v18, %v1597_v42 }
  0xd2   :  { %v1588_v54 = vmul.f32 0.0006510417, %v1580_v27 }
  0xd3   :  { %v1613_v53 = vmax.f32 %v1605_v57, 0.0  ;;  %1671 = vperm.xlu1 %2311, %v2445_v47  }
  0xd4   :  { %v1604_v35 = vsub.f32 %v1588_v54, %v1596_v39 }
  0xd5   :  { %v1621_v52 = vadd.f32 1e-05, %v1613_v53 }
  0xd6   :  { %v1612_v2 = vmax.f32 %v1604_v35, 0.0 }
  0xd7   :  { %2448 = vrsqrt.f32 %v1621_v52  ;;  %1733 = vperm.xlu1 %2311, %v1698_v17  }
  0xd8   :  { %2450 = vrsqrt.f32 %v1622_v50  ;;  %v1620_v20 = vadd.f32 1e-05, %v1612_v2 }
  0xda   :  { %v2447_v9 = vpop.eup %2446  ;;  %2452 = vrsqrt.f32 %v1620_v20 }
  0xdb   :  { %1661 = vperm.xlu0 %2310, %v2447_v9   ;;  %1738 = vperm.xlu1 %2311, %v1699_v59   ;;  %v1695_v23 = vmul.f32 %v2447_v9, %v1575_v55 }
  0xdf   :  { %1718 = vperm.xlu0 %2310, %v1695_v23   ;;  %1723 = vperm.xlu1 %2311, %v1696_v63  }
  0xe3   :  { %1728 = vperm.xlu1 %2311, %v1697_v0  }
  0xe4   :  { %v2449_v41 = vpop.eup %2448 }
  0xe5   :  { %1651 = vperm.xlu0 %2310, %v2449_v41   ;;  %v2451_v16 = vpop.eup %2450  ;;  %v1693_v5 = vmul.f32 %v2449_v41, %v1573_v44 }
  0xe6   :  { %v1694_v51 = vmul.f32 %v2451_v16, %v1574_v29 }
  0xe7   :  { %1656 = vperm.xlu1 %2311, %v2451_v16   ;;  %v2453_v8 = vpop.eup %2452 }
  0xe8   :  { %v2120_v61 = vpop.f32.mrf.mxu0  ;;  %v1692_v3 = vmul.f32 %v2453_v8, %v1572_v30 }
  0xe9   :  { %1708 = vperm.xlu0 %2310, %v1693_v5  }
  0xea   :  { %v2121_v32 = vpop.f32.mrf.mxu0 }
  0xeb   :  { %1713 = vperm.xlu1 %2311, %v1694_v51   ;;  %v2122_v33 = vadd.f32 %v2121_v32, %v2120_v61 }
  0xec   :  { %v2123_v14 = vpop.f32.mrf.mxu0 }
  0xee   :  { %v2124_v46 = vpop.f32.mrf.mxu0 }
  0xef   :  { %1646 = vperm.xlu1 %2311, %v2453_v8   ;;  %v3191_v1 = vadd.f32 %v2124_v46, %v2123_v14  ;;  %v2160_v12 = vpop.f32.mrf.mxu1 }
  0xf1   :  { %3370 = vst [vmem:[#allocation3_spill] sm:$0xff] %v3191_v1  ;;  %v2161_v25 = vpop.f32.mrf.mxu1 }
  0xf2   :  { %v2162_v21 = vadd.f32 %v2161_v25, %v2160_v12 }
  0xf3   :  { %1703 = vperm.xlu1 %2311, %v1692_v3   ;;  %v3195_v26 = vpop.f32.mrf.mxu1 }
  0xf4   :  { %v732_v22 = vadd.f32 %v2162_v21, %v2122_v33 }
  0xf5   :  { %v2126_v45 = vpop.f32.mrf.mxu0  ;;  %v3199_v6 = vpop.f32.mrf.mxu1 }
  0xf7   :  { %v2127_v60 = vpop.f32.mrf.mxu0 }
  0xf8   :  { %v3193_v55 = vadd.f32 %v2127_v60, %v2126_v45  ;;  %v3205_v7 = vpop.f32.mrf.mxu1 }
  0xf9   :  { %v2129_v4 = vpop.f32.mrf.mxu0 }
  0xfa   :  { %3371 = vst [vmem:[#allocation4_spill] sm:$0xff] %v3193_v55  ;;  %v3211_v10 = vpop.f32.mrf.mxu1 }
  0xfb   :  { %v2130_v56 = vpop.f32.mrf.mxu0 }
  0xfc   :  { %v3197_v62 = vadd.f32 %v2130_v56, %v2129_v4  ;;  %v3213_v37 = vpop.f32.mrf.mxu1 }
  0xfe   :  { %v3215_v40 = vpop.f32.mrf.mxu1 }
  0xff   :  { %v3201_v24 = vpop.f32.mrf.mxu0 }
 0x101   :  { %v3203_v15 = vpop.f32.mrf.mxu0  ;;  %v2172_v43 = vpop.f32.mrf.mxu1 }
 0x103   :  { %v3207_v28 = vpop.f32.mrf.mxu0  ;;  %v2173_v30 = vpop.f32.mrf.mxu1 }
 0x105   :  { %v3209_v29 = vpop.f32.mrf.mxu0  ;;  %v3227_v27 = vpop.f32.mrf.mxu1 }
 0x107   :  { %v2138_v31 = vpop.f32.mrf.mxu0  ;;  %v2176_v47 = vpop.f32.mrf.mxu1 }
 0x109   :  { %v2139_v36 = vpop.f32.mrf.mxu0  ;;  %v2178_v53 = vpop.f32.mrf.mxu1 }
 0x10a   :  { %v2140_v25 = vadd.f32 %v2139_v36, %v2138_v31  ;;  %v2134_v31 = vadd.f32 %v3203_v15, %v3201_v24  ;;  %v2137_v24 = vadd.f32 %v3209_v29, %v3207_v28  ;;  %v2177_v15 = vadd.f32 %v2176_v47, %v3227_v27 }
 0x10b   :  { %v2141_v19 = vpop.f32.mrf.mxu0  ;;  %v2179_v35 = vpop.f32.mrf.mxu1 }
 0x10c   :  { %v2180_v21 = vadd.f32 %v2179_v35, %v2178_v53  ;;  %v3242_v53 = vld [vmem:[%s3363_s4] ss:$0 sm:$0xff]  ;;  %v2174_v35 = vadd.f32 %v2173_v30, %v2172_v43 }
 0x10d   :  { %v2142_v38 = vpop.f32.mrf.mxu0  ;;  %v2181_v2 = vpop.f32.mrf.mxu1 }
 0x10f   :  { %v2200_v44 = vpop.f32.mrf.mxu0  ;;  %v2182_v9 = vpop.f32.mrf.mxu1 }
 0x110   :  { %v2183_v55 = vadd.f32 %v2182_v9, %v2181_v2 }
 0x111   :  { %v2201_v58 = vpop.f32.mrf.mxu0  ;;  %v2240_v20 = vpop.f32.mrf.mxu1 }
 0x112   :  { %v2202_v11 = vadd.f32 %v2201_v58, %v2200_v44 }
 0x113   :  { %v3217_v48 = vpop.f32.mrf.mxu0  ;;  %v2241_v63 = vpop.f32.mrf.mxu1 }
 0x114   :  { %v3219_v34 = vadd.f32 %v2202_v11, %v732_v22  ;;  %v2242_v3 = vadd.f32 %v2241_v63, %v2240_v20  ;;  %v2143_v11 = vadd.f32 %v2142_v38, %v2141_v19  ;;  %v751_v63 = vadd.f32 %v2177_v15, %v2137_v24 }
 0x115   :  { %v3221_v42 = vpop.f32.mrf.mxu0  ;;  %v2243_v41 = vpop.f32.mrf.mxu1 }
 0x116   :  { %3372 = vst [vmem:[#allocation5_spill] sm:$0xff] %v3219_v34  ;;  %3373 = vst [vmem:[#allocation6_spill] sm:$0xff] %v3221_v42  ;;  %v756_v34 = vadd.f32 %v2180_v21, %v2140_v25  ;;  %v759_v19 = vadd.f32 %v2183_v55, %v2143_v11  ;;  %v2171_v55 = vadd.f32 %v3215_v40, %v3213_v37  ;;  %v3377_v25 = vld [vmem:[#allocation3_spill] sm:$0xff] }
 0x117   :  { %v3223_v18 = vpop.f32.mrf.mxu0  ;;  %v2244_v5 = vpop.f32.mrf.mxu1 }
 0x118   :  { %3374 = vst [vmem:[#allocation7_spill] sm:$0xff] %v3223_v18  ;;  %v2245_v58 = vadd.f32 %v2244_v5, %v2243_v41  ;;  %v743_v37 = vadd.f32 %v2171_v55, %v3197_v62 }
 0x119   :  { %v3225_v49 = vpop.f32.mrf.mxu0 }
 0x11a   :  { %3375 = vst [vmem:[#allocation8_spill] sm:$0xff] %v3225_v49 }
 0x11b   :  { %v3229_v13 = vpop.f32.mrf.mxu0 }
 0x11d   :  { %v3231_v57 = vpop.f32.mrf.mxu0 }
 0x11f   :  { %v2212_v54 = vpop.f32.mrf.mxu0 }
 0x121   :  { %v2213_v39 = vpop.f32.mrf.mxu0 }
 0x123   :  { %v3233_v50 = vpop.f32.mrf.mxu0 }
 0x125   :  { %v2216_v52 = vpop.f32.mrf.mxu0 }
 0x127   :  { %v2218_v17 = vpop.f32.mrf.mxu0 }
 0x129   :  { %v2219_v59 = vpop.f32.mrf.mxu0 }
 0x12a   :  { %v2220_v44 = vadd.f32 %v2219_v59, %v2218_v17  ;;  %v2214_v59 = vadd.f32 %v2213_v39, %v2212_v54 }
 0x12b   :  { %v2221_v23 = vpop.f32.mrf.mxu0 }
 0x12c   :  { %v821_v1 = vadd.f32 %v2220_v44, %v756_v34 }
 0x12d   :  { %v2222_v0 = vpop.f32.mrf.mxu0 }
 0x12e   :  { %v2223_v42 = vadd.f32 %v2222_v0, %v2221_v23  ;;  %v3252_v23 = vld [vmem:[%s3364_s5] ss:$0 sm:$0xff] }
 0x12f   :  { %v2262_v16 = vpop.f32.mrf.mxu0 }
 0x130   :  { %v824_v9 = vadd.f32 %v2223_v42, %v759_v19  ;;  %v2211_v42 = vadd.f32 %v3231_v57, %v3229_v13  ;;  %v2165_v13 = vadd.f32 %v3199_v6, %v3195_v26 }
 0x131   :  { %v2263_v61 = vpop.f32.mrf.mxu0  ;;  %v2284_v51 = vpop.f32.mrf.mxu1 }
 0x132   :  { %v2264_v14 = vadd.f32 %v2263_v61, %v2262_v16  ;;  %v808_v5 = vadd.f32 %v2211_v42, %v743_v37  ;;  %v735_v21 = vadd.f32 %v2165_v13, %v3377_v25 }
 0x133   :  { %v2265_v32 = vpop.f32.mrf.mxu0  ;;  %v2285_v33 = vpop.f32.mrf.mxu1 }
 0x134   :  { %v1317_v22 = vadd.f32 %v2264_v14, %v2242_v3  ;;  %v2286_v45 = vadd.f32 %v2285_v33, %v2284_v51  ;;  %v2168_v33 = vadd.f32 %v3211_v10, %v3205_v7  ;;  %v3376_v14 = vld [vmem:[#allocation6_spill] sm:$0xff] }
 0x135   :  { %v2266_v8 = vpop.f32.mrf.mxu0  ;;  %v2287_v46 = vpop.f32.mrf.mxu1 }
 0x136   :  { %v2267_v60 = vadd.f32 %v2266_v8, %v2265_v32  ;;  %v3235_v49 = vadd.f32 %v2286_v45, %v1317_v22  ;;  %v2205_v8 = vadd.f32 %v3376_v14, %v3217_v48  ;;  %v3378_v22 = vld [vmem:[#allocation7_spill] sm:$0xff]  ;;  %v3379_v45 = vld [vmem:[#allocation8_spill] sm:$0xff] }
 0x137   :  { %v2288_v4 = vpop.f32.mrf.mxu1  ;;  %v3380_v48 = vld [vmem:[#allocation4_spill] sm:$0xff] }
 0x138   :  { %v1320_v18 = vadd.f32 %v2267_v60, %v2245_v58  ;;  %v2289_v16 = vadd.f32 %v2288_v4, %v2287_v46  ;;  %v1642_v17 = vadd.f32 %v3235_v49, %v821_v1  ;;  %v748_v1 = vadd.f32 %v2174_v35, %v2134_v31 }
 0x139   :  { %v2208_v60 = vadd.f32 %v3379_v45, %v3378_v22  ;;  %v740_v58 = vadd.f32 %v2168_v33, %v3380_v48 }
 0x13a   :  { %v1361_v38 = vadd.f32 %v2289_v16, %v1320_v18  ;;  %v2217_v18 = vadd.f32 %v2216_v52, %v3233_v50  ;;  %v813_v29 = vadd.f32 %v2214_v59, %v748_v1  ;;  %v800_v16 = vadd.f32 %v2205_v8, %v735_v21 }
 0x13b   :  { %v805_v19 = vadd.f32 %v2208_v60, %v740_v58 }
 0x13c   :  { %v1643_v43 = vadd.f32 %v1361_v38, %v824_v9  ;;  %v1640_v40 = vadd.f32 %v3235_v49, %v813_v29  ;;  %v816_v57 = vadd.f32 %v2217_v18, %v751_v63  ;;  %v1639_v6 = vadd.f32 %v1361_v38, %v808_v5  ;;  %v3381_v29 = vld [vmem:[#allocation5_spill] sm:$0xff] }
 0x13d   :  { %v1682_v12 = vpop.permute.xlu1 %1681  ;;  %v1638_v9 = vadd.f32 %v3235_v49, %v805_v19 }
 0x13e   :  { %v1691_v27 = vmul.f32 %v1682_v12, %v1643_v43  ;;  %v1641_v26 = vadd.f32 %v1361_v38, %v816_v57 }
 0x140   :  { %v1677_v36 = vpop.permute.xlu0 %1676 }
 0x141   :  { %v1690_v20 = vmul.f32 %v1677_v36, %v1642_v17 }
 0x14a   :  { %v1667_v56 = vpop.permute.xlu1 %1666 }
 0x14b   :  { %v1688_v51 = vmul.f32 %v1667_v56, %v1640_v40 }
 0x14e   :  { %v1672_v61 = vpop.permute.xlu1 %1671 }
 0x14f   :  { %v1689_v56 = vmul.f32 %v1672_v61, %v1641_v26 }
 0x152   :  { %v1734_v2 = vpop.permute.xlu1 %1733 }
 0x153   :  { %v1753_v34 = vmul.f32 %v3242_v53, %v1734_v2  ;;  %v1637_v2 = vadd.f32 %v1361_v38, %v800_v16 }
 0x155   :  { %v1761_v30 = vsub.f32 %v1690_v20, %v1753_v34 }
 0x156   :  { %v1662_v54 = vpop.permute.xlu0 %1661  ;;  %v1739_v28 = vpop.permute.xlu1 %1738 }
 0x157   :  { %v1754_v47 = vmul.f32 %v3242_v53, %v1739_v28  ;;  %v3261_v39 = vadd.f32 %v3252_v23, %v1761_v30  ;;  %v1687_v44 = vmul.f32 %v1662_v54, %v1639_v6 }
 0x159   :  { %v1762_v0 = vsub.f32 %v1691_v27, %v1754_v47  ;;  %v1784_v41 = vmax.f32 %v3261_v39, 0.0  ;;  %v1636_v27 = vadd.f32 %v3235_v49, %v3381_v29 }
 0x15a   :  { %v1719_v50 = vpop.permute.xlu0 %1718  ;;  %v1724_v52 = vpop.permute.xlu1 %1723 }
 0x15b   :  { %v1751_v32 = vmul.f32 %v3242_v53, %v1724_v52  ;;  %1798 = vadd.xlane.f32.xlu1 %v1784_v41  ;;  %v3272_v62 = vadd.f32 %v3252_v23, %v1762_v0  ;;  %v1750_v46 = vmul.f32 %v3242_v53, %v1719_v50  ;;  %v15_v52 = vstv %s3365_s9 }
 0x15c   :  { %16 = vst [vmem:[#allocation2] sm:$0x1] %v15_v52 }
 0x15d   :  { %v1759_v12 = vsub.f32 %v1688_v51, %v1751_v32  ;;  %v1785_v3 = vmax.f32 %v3272_v62, 0.0  ;;  %v1758_v31 = vsub.f32 %v1687_v44, %v1750_v46 }
 0x15e   :  { %v1729_v4 = vpop.permute.xlu1 %1728 }
 0x15f   :  { %v1752_v7 = vmul.f32 %v3242_v53, %v1729_v4  ;;  %1800 = vadd.xlane.f32.xlu0 %v1785_v3  ;;  %v1774_v10 = vadd.f32 %v3252_v23, %v1759_v12  ;;  %v1773_v15 = vadd.f32 %v3252_v23, %v1758_v31 }
 0x160   :  { %v1652_v11 = vpop.permute.xlu0 %1651 }
 0x161   :  { %v1760_v36 = vsub.f32 %v1689_v56, %v1752_v7  ;;  %v1782_v35 = vmax.f32 %v1774_v10, 0.0  ;;  %v1685_v20 = vmul.f32 %v1652_v11, %v1637_v2  ;;  %v1781_v38 = vmax.f32 %v1773_v15, 0.0 }
 0x162   :  { %v1657_v17 = vpop.permute.xlu1 %1656 }
 0x163   :  { %1794 = vadd.xlane.f32.xlu0 %v1782_v35  ;;  %v1775_v59 = vadd.f32 %v3252_v23, %v1760_v36  ;;  %v1686_v43 = vmul.f32 %v1657_v17, %v1638_v9  ;;  %v2475_v36 = vmov 0.0  }
 0x164   :  { %v1709_v61 = vpop.permute.xlu0 %1708  ;;  %2295 = vmatprep.subr.bf16.mxu0 %v2475_v36  ;;  %2303 = vmatprep.mubr.msk.bf16.mxu0 %vm2476_vm0, %v2475_v36 }
 0x165   :  { %v1748_v34 = vmul.f32 %v3242_v53, %v1709_v61  ;;  %v1783_v24 = vmax.f32 %v1775_v59, 0.0 }
 0x166   :  { %v1714_v55 = vpop.permute.xlu1 %1713 }
 0x167   :  { %v1756_v1 = vsub.f32 %v1685_v20, %v1748_v34  ;;  %v1749_v30 = vmul.f32 %v3242_v53, %v1714_v55  ;;  %1796 = vadd.xlane.f32.xlu1 %v1783_v24 }
 0x169   :  { %v1757_v42 = vsub.f32 %v1686_v43, %v1749_v30  ;;  %v1771_v18 = vadd.f32 %v3252_v23, %v1756_v1 }
 0x16a   :  { %v1647_v54 = vpop.permute.xlu1 %1646 }
 0x16b   :  { %1792 = vadd.xlane.f32.xlu1 %v1781_v38  ;;  %v1772_v28 = vadd.f32 %v3252_v23, %v1757_v42  ;;  %v1779_v63 = vmax.f32 %v1771_v18, 0.0  ;;  %v1684_v40 = vmul.f32 %v1647_v54, %v1636_v27 }
 0x16d   :  { %v1780_v47 = vmax.f32 %v1772_v28, 0.0 }
 0x16e   :  { %v1704_v37 = vpop.permute.xlu1 %1703 }
 0x16f   :  { %v1747_v0 = vmul.f32 %v3242_v53, %v1704_v37  ;;  %1790 = vadd.xlane.f32.xlu0 %v1780_v47  ;;  %1788 = vadd.xlane.f32.xlu1 %v1779_v63 }
 0x171   :  { %v1755_v13 = vsub.f32 %v1684_v40, %v1747_v0 }
 0x173   :  { %v1770_v57 = vadd.f32 %v3252_v23, %v1755_v13  ;;  %v2102_v13 = vld [vmem:[%s3366_s6] ss:$0 sm:$0xff] }
 0x175   :  { %v1778_v50 = vmax.f32 %v1770_v57, 0.0 }
 0x177   :  { %1786 = vadd.xlane.f32.xlu0 %v1778_v50 }
 0x1e4   :  { %v1799_v5 = vpop.xlane.xlu1 %1798 }
 0x1e5   :  { %v1809_v49 = vmul.f32 0.0078125, %v1799_v5 }
 0x1e7   :  { %v3302_v51 = vsub.f32 %v1784_v41, %v1809_v49 }
 0x1e8   :  { %v1801_v32 = vpop.xlane.xlu0 %1800 }
 0x1e9   :  { %v1810_v53 = vmul.f32 0.0078125, %v1801_v32  ;;  %v1825_v62 = vmul.f32 %v3302_v51, %v3302_v51 }
 0x1eb   :  { %v3306_v33 = vsub.f32 %v1785_v3, %v1810_v53  ;;  %1839 = vadd.xlane.f32.xlu0 %v1825_v62  ;;  %v2103_v62 = vld [vmem:[%s3367_s7] ss:$0 sm:$0xff] }
 0x1ec   :  { %v1795_v23 = vpop.xlane.xlu0 %1794 }
 0x1ed   :  { %v1807_v14 = vmul.f32 0.0078125, %v1795_v23  ;;  %v1826_v8 = vmul.f32 %v3306_v33, %v3306_v33 }
 0x1ef   :  { %v3310_v26 = vsub.f32 %v1782_v35, %v1807_v14  ;;  %1841 = vadd.xlane.f32.xlu1 %v1826_v8  ;;  %v1918_v35 = vld [vmem:[#allocation2] sm:$0x1] }
 0x1f0   :  { %v1797_v6 = vpop.xlane.xlu1 %1796 }
 0x1f1   :  { %v1808_v39 = vmul.f32 0.0078125, %v1797_v6  ;;  %v1823_v41 = vmul.f32 %v3310_v26, %v3310_v26 }
 0x1f3   :  { %v3314_v46 = vsub.f32 %v1783_v24, %v1808_v39  ;;  %1835 = vadd.xlane.f32.xlu0 %v1823_v41 }
 0x1f4   :  { %v1793_v12 = vpop.xlane.xlu1 %1792 }
 0x1f5   :  { %v1806_v3 = vmul.f32 0.0078125, %v1793_v12  ;;  %v1824_v25 = vmul.f32 %v3314_v46, %v3314_v46 }
 0x1f7   :  { %v3318_v21 = vsub.f32 %v1781_v38, %v1806_v3  ;;  %1837 = vadd.xlane.f32.xlu1 %v1824_v25 }
 0x1f8   :  { %v1789_v22 = vpop.xlane.xlu1 %1788  ;;  %v1791_v45 = vpop.xlane.xlu0 %1790 }
 0x1f9   :  { %v1804_v60 = vmul.f32 0.0078125, %v1789_v22  ;;  %v1805_v4 = vmul.f32 0.0078125, %v1791_v45  ;;  %v1822_v56 = vmul.f32 %v3318_v21, %v3318_v21 }
 0x1fb   :  { %v3322_v44 = vsub.f32 %v1779_v63, %v1804_v60  ;;  %v3324_v7 = vsub.f32 %v1780_v47, %v1805_v4  ;;  %1833 = vadd.xlane.f32.xlu1 %v1822_v56 }
 0x1fd   :  { %v1820_v10 = vmul.f32 %v3322_v44, %v3322_v44  ;;  %v1821_v48 = vmul.f32 %v3324_v7, %v3324_v7 }
 0x1ff   :  { %1829 = vadd.xlane.f32.xlu1 %v1820_v10  ;;  %1831 = vadd.xlane.f32.xlu0 %v1821_v48 }
 0x200   :  { %v1787_v58 = vpop.xlane.xlu0 %1786 }
 0x201   :  { %v1803_v11 = vmul.f32 0.0078125, %v1787_v58 }
 0x203   :  { %v3330_v16 = vsub.f32 %v1778_v50, %v1803_v11 }
 0x205   :  { %v1819_v31 = vmul.f32 %v3330_v16, %v3330_v16 }
 0x207   :  { %1827 = vadd.xlane.f32.xlu0 %v1819_v31 }
 0x21d   :  { %1921 = vperm.xlu0 %2310, %v1918_v35  }
 0x274   :  { %v1840_v19 = vpop.xlane.xlu0 %1839 }
 0x275   :  { %v1849_v17 = vmul.f32 0.0078125, %v1840_v19 }
 0x277   :  { %v1857_v2 = vmax.f32 %v1849_v17, 0.0 }
 0x278   :  { %v1842_v59 = vpop.xlane.xlu1 %1841 }
 0x279   :  { %v1865_v61 = vadd.f32 1e-05, %v1857_v2  ;;  %v1850_v9 = vmul.f32 0.0078125, %v1842_v59 }
 0x27b   :  { %2454 = vrsqrt.f32 %v1865_v61  ;;  %v1858_v20 = vmax.f32 %v1850_v9, 0.0 }
 0x27c   :  { %v1836_v34 = vpop.xlane.xlu0 %1835 }
 0x27d   :  { %v1866_v24 = vadd.f32 1e-05, %v1858_v20  ;;  %v1847_v15 = vmul.f32 0.0078125, %v1836_v34 }
 0x27f   :  { %2456 = vrsqrt.f32 %v1866_v24  ;;  %v1855_v55 = vmax.f32 %v1847_v15, 0.0 }
 0x280   :  { %v1838_v1 = vpop.xlane.xlu1 %1837 }
 0x281   :  { %v1863_v43 = vadd.f32 1e-05, %v1855_v55  ;;  %v1848_v30 = vmul.f32 0.0078125, %v1838_v1 }
 0x283   :  { %2458 = vrsqrt.f32 %v1863_v43  ;;  %v1856_v42 = vmax.f32 %v1848_v30, 0.0 }
 0x284   :  { %v1834_v38 = vpop.xlane.xlu1 %1833 }
 0x285   :  { %v1864_v18 = vadd.f32 1e-05, %v1856_v42  ;;  %v1846_v54 = vmul.f32 0.0078125, %v1834_v38 }
 0x287   :  { %2460 = vrsqrt.f32 %v1864_v18  ;;  %v1854_v28 = vmax.f32 %v1846_v54, 0.0 }
 0x288   :  { %v2455_v29 = vpop.eup %2454  ;;  %v1830_v27 = vpop.xlane.xlu1 %1829 }
 0x289   :  { %v1832_v47 = vpop.xlane.xlu0 %1831  ;;  %v1862_v63 = vadd.f32 1e-05, %v1854_v28  ;;  %v1844_v37 = vmul.f32 0.0078125, %v1830_v27  ;;  %v1881_v0 = vmul.f32 %v2455_v29, %v3302_v51 }
 0x28a   :  { %v1845_v40 = vmul.f32 0.0078125, %v1832_v47 }
 0x28b   :  { %2462 = vrsqrt.f32 %v1862_v63  ;;  %v1852_v57 = vmax.f32 %v1844_v37, 0.0  ;;  %v1896_v5 = vmul.f32 %v2102_v13, %v1881_v0 }
 0x28c   :  { %v1853_v50 = vmax.f32 %v1845_v40, 0.0  ;;  %v2457_v52 = vpop.eup %2456 }
 0x28d   :  { %v1860_v49 = vadd.f32 1e-05, %v1852_v57  ;;  %v1882_v53 = vmul.f32 %v2457_v52, %v3306_v33  ;;  %v1911_v8 = vadd.f32 %v2103_v62, %v1896_v5 }
 0x28e   :  { %v1861_v32 = vadd.f32 1e-05, %v1853_v50 }
 0x28f   :  { %v1897_v23 = vmul.f32 %v2102_v13, %v1882_v53 }
 0x290   :  { %v2459_v14 = vpop.eup %2458  ;;  %2464 = vrsqrt.f32 %v1861_v32  ;;  %v1828_v51 = vpop.xlane.xlu0 %1827 }
 0x291   :  { %2466 = vrsqrt.f32 %v1860_v49  ;;  %v1843_v6 = vmul.f32 0.0078125, %v1828_v51  ;;  %v1912_v39 = vadd.f32 %v2103_v62, %v1897_v23  ;;  %v1879_v41 = vmul.f32 %v2459_v14, %v3310_v26 }
 0x293   :  { %v1851_v12 = vmax.f32 %v1843_v6, 0.0  ;;  %v1917_v3 = vpack.c.bf16 %v1912_v39, %v1911_v8  ;;  %v1894_v45 = vmul.f32 %v2102_v13, %v1879_v41 }
 0x294   :  { %v2461_v25 = vpop.eup %2460 }
 0x295   :  { %v1859_v22 = vadd.f32 1e-05, %v1851_v12  ;;  %2296 = vmatpush3.bf16.xpose.msra.mxu0 %v1917_v3  ;;  %v1880_v33 = vmul.f32 %v2461_v25, %v3314_v46  ;;  %v1909_v56 = vadd.f32 %v2103_v62, %v1894_v45 }
 0x296   :  { %2297 = vmatprep.subr.bf16.mxu0 %v2475_v36 }
 0x297   :  { %2468 = vrsqrt.f32 %v1859_v22  ;;  %v1895_v60 = vmul.f32 %v2102_v13, %v1880_v33 }
 0x298   :  { %v2463_v4 = vpop.eup %2462  ;;  %v1922_v43 = vpop.permute.xlu0 %1921 }
 0x299   :  { %v1910_v10 = vadd.f32 %v2103_v62, %v1895_v60  ;;  %v1878_v48 = vmul.f32 %v2463_v4, %v3318_v21 }
 0x29b   :  { %v1916_v58 = vpack.c.bf16 %v1910_v10, %v1909_v56  ;;  %v1893_v35 = vmul.f32 %v2102_v13, %v1878_v48 }
 0x29d   :  { %v2465_v11 = vpop.eup %2464  ;;  %2298 = vmatpush3.bf16.xpose.msra.mxu0 %v1916_v58  ;;  %v1908_v2 = vadd.f32 %v2103_v62, %v1893_v35 }
 0x29e   :  { %v2467_v26 = vpop.eup %2466  ;;  %2299 = vmatprep.subr.bf16.mxu0 %v2475_v36  ;;  %v1877_v31 = vmul.f32 %v2465_v11, %v3324_v7  ;;  %v1913_v7 = vld [vmem:[%s3368_s8] sm:$0x1] }
 0x29f   :  { %v1876_v19 = vmul.f32 %v2467_v26, %v3322_v44  ;;  %v1924_v44 = vlaneseq }
 0x2a0   :  { %v1892_v46 = vmul.f32 %v2102_v13, %v1877_v31 }
 0x2a1   :  { %v1891_v20 = vmul.f32 %v2102_v13, %v1876_v19  ;;  %v1925_v55 = vshrl.u32 %v1924_v44, 7 }
 0x2a2   :  { %v1907_v17 = vadd.f32 %v2103_v62, %v1892_v46 }
 0x2a3   :  { %v1906_v24 = vadd.f32 %v2103_v62, %v1891_v20  ;;  %v1926_v1 = vsub.s32 0, %v1925_v55 }
 0x2a4   :  { %v2469_v59 = vpop.eup %2468  ;;  %v1915_v61 = vpack.c.bf16 %v1908_v2, %v1907_v17 }
 0x2a5   :  { %v1875_v9 = vmul.f32 %v2469_v59, %v3330_v16  ;;  %v1927_v30 = vrot.slane %v1922_v43, %v1926_v1 }
 0x2a6   :  { %2300 = vmatpush3.bf16.xpose.msra.mxu0 %v1915_v61 }
 0x2a7   :  { %2301 = vmatprep.subr.bf16.mxu0 %v2475_v36  ;;  %v1890_v21 = vmul.f32 %v2102_v13, %v1875_v9 }
 0x2a9   :  { %v1905_v34 = vadd.f32 %v2103_v62, %v1890_v21 }
 0x2ab   :  { %v1914_v15 = vpack.c.bf16 %v1906_v24, %v1905_v34 }
 0x2ae   :  { %2302 = vmatpush3.bf16.xpose.msra.mxu0 %v1914_v15 }
 0x2b5   :  { %2304 = vmatmul.mubr.bf16.vlgmr.msra.gmra.mxu0 %v1913_v7 }
 0x375   :  { %v1962_v16 = vpop.f32.mrf.mxu0 }
 0x376   :  { %v1963_v42 = vadd.f32 %v1962_v16, %v1927_v30 }
 0x377   :  { %v2305_v38 = vpop.f32.mrf.mxu0 }
 0x378   :  { %1969 = vst.msk [vmem:[%s3369_s10] sm:$0x1] %vm1968_vm1, %v1963_v42 }
 0x379   :  { %v1965_v36 = vpop.f32.mrf.mxu0 }
 0x37b   :  { %v2306_v18 = vpop.f32.mrf.mxu0 }

</bundles_post_ra>
